<compile_context>
chip_gen: v7x
topology: tpu7x:2x2x1
jax: 0.10.0
libtpu: 0.0.40
codegen_flags: <defaults>
</compile_context>

<pallas_src>
import jax
import jax.numpy as jnp
from jax.experimental import pallas as pl
from jax.experimental.pallas import tpu as pltpu


def _round_up(v, m):
    return (v + m - 1) // m * m


# ----------------------------- module spec -------------------------------- #
def build_layer_specs(num_kernels):
    specs = []
    for i in range(num_kernels, 0, -1):
        specs.append(("conv", 2 * i + 1, i, 1))           # (kind, k, pad, stride)
    specs.append(("conv", 1, 0, 1))
    for i in range(1, num_kernels + 1):
        specs.append(("convt", 2 * i + 1, i, i + 1))
    return specs


def init_branch(key, in_ch, out_ch, specs):
    params = []
    keys = jax.random.split(key, len(specs))
    for kk, (kind, k, pad, stride) in zip(keys, specs):
        shape = (out_ch, in_ch, k, k) if kind == "conv" else (in_ch, out_ch, k, k)
        fan_out = (shape[0] if kind == "conv" else shape[1]) * k * k   # kaiming fan_out
        std = (2.0 / fan_out) ** 0.5
        w = std * jax.random.normal(kk, shape, jnp.float32)
        b = jnp.zeros((out_ch,), jnp.float32)
        params.append({"w": w, "b": b})
    return params


# ------------------------------ static plan -------------------------------- #
def _plan(specs, C_out, N, H, W):
    """Trace-time plan shared by weight packing, the kernel and unpacking."""
    conv_pads = [p for (kind, k, p, s) in specs if kind == "conv"]
    ring = max(conv_pads + [1])                       # zero ring baked into the slab
    Hp, Wp = H + 2 * ring, W + 2 * ring

    taps = set()
    layers = []
    row = 0
    for (kind, k, p, s) in specs:
        if kind == "conv":
            assert 2 * p == k - 1, "fused kernel assumes same-size convs (pad=(k-1)/2)"
            for dy in range(k):
                for dx in range(k):
                    taps.add((dy - p, dx - p))
            layers.append(dict(kind="conv", k=k, p=p, row0=row))
            row += C_out
        else:
            # Polyphase decomposition of ConvTranspose2d(k, stride=s, padding=p):
            # output y = s*q + r uses kernel rows a == (y+p) mod s, reading input
            # row q + delta with delta = (r+p)//s - m, a = (r+p)%s + s*m.
            Hd = (H - 1) * s - 2 * p + k
            Wd = (W - 1) * s - 2 * p + k
            assert (Hd + s - 1) // s <= H and (Wd + s - 1) // s <= W
            phases = []
            for r in range(s):
                alpha = (r + p) % s
                beta = (r + p) // s
                tl = []
                for m in range((k - alpha + s - 1) // s):
                    a = alpha + s * m                  # kernel tap index
                    delta = beta - m                   # input offset relative to q
                    assert -ring <= delta <= ring, "zero ring too small for polyphase taps"
                    tl.append((delta, a))
                phases.append(tl)
            phase_rc, ph_rows = [], []
            for r in range(s):
                for c in range(s):
                    for (dh, _a) in phases[r]:
                        for (dw, _b) in phases[c]:
                            taps.add((dh, dw))
                    phase_rc.append((r, c))
                    ph_rows.append(row)
                    row += C_out
            layers.append(dict(kind="convt", k=k, p=p, s=s, Hd=Hd, Wd=Wd,
                               phases=phases, phase_rc=phase_rc, ph_rows=ph_rows))

    R = _round_up(max(row, 8), 8)                     # output rows (sublane aligned)
    tap_order = sorted(taps)
    tap_index = {t: i for i, t in enumerate(tap_order)}
    M_data = N * Hp * Wp                              # flattened padded spatial axis
    BR = _round_up(M_data, 128)                       # lane-dense column count / branch
    max_shift = max(abs(dh) * Wp + abs(dw) for (dh, dw) in tap_order)
    MAR = _round_up(max(max_shift, 1), 128)           # slab margin covering all shifts
    WIDTH = 2 * MAR + BR
    tap_shifts = [dh * Wp + dw for (dh, dw) in tap_order]
    return dict(ring=ring, Hp=Hp, Wp=Wp, M_data=M_data, BR=BR, MAR=MAR,
                WIDTH=WIDTH, tap_order=tap_order, tap_index=tap_index,
                tap_shifts=tap_shifts, layers=layers, R=R)


# --------------------------- host-side packing ----------------------------- #
def _build_slab(t, C_pad, ring, MAR, WIDTH):
    # (N, C, H, W) -> (C_pad, WIDTH): channel-major flat slab with a baked
    # per-image zero ring of width `ring` and zero margins for tap shifts.
    N, C, H, W = t.shape
    Hp, Wp = H + 2 * ring, W + 2 * ring
    tp = jnp.pad(t, ((0, 0), (0, C_pad - C), (ring, ring), (ring, ring)))
    flat = jnp.transpose(tp, (1, 0, 2, 3)).reshape(C_pad, N * Hp * Wp)
    return jnp.pad(flat, ((0, 0), (MAR, WIDTH - MAR - N * Hp * Wp)))


def _pack_branch(params, specs, meta, C_pad, C_out):
    # Embed every layer (and every transposed-conv phase) into one
    # (R, n_taps*C_pad) weight matrix matching the kernel's tap-patch layout.
    n_taps = len(meta["tap_order"])
    tap_index = meta["tap_index"]
    R = meta["R"]
    lhs = jnp.zeros((R, n_taps, C_pad), jnp.float32)
    bias = jnp.zeros((R, 1), jnp.float32)
    for lm, prm in zip(meta["layers"], params):
        w, b = prm["w"], prm["b"]
        if lm["kind"] == "conv":
            k, p, r0 = lm["k"], lm["p"], lm["row0"]
            C_in = w.shape[1]
            for dy in range(k):
                for dx in range(k):
                    t = tap_index[(dy - p, dx - p)]
                    lhs = lhs.at[r0:r0 + C_out, t, :C_in].set(w[:, :, dy, dx])
            bias = bias.at[r0:r0 + C_out, 0].set(b)
        else:
            C_in = w.shape[0]                         # torch (C_in, C_out, k, k)
            for pi, (r, c) in enumerate(lm["phase_rc"]):
                r0 = lm["ph_rows"][pi]
                for (dh, a) in lm["phases"][r]:
                    for (dw, bb) in lm["phases"][c]:
                        t = tap_index[(dh, dw)]
                        lhs = lhs.at[r0:r0 + C_out, t, :C_in].set(w[:, :, a, bb].T)
                bias = bias.at[r0:r0 + C_out, 0].set(b)
    return lhs.reshape(R, n_taps * C_pad), bias


# ------------------------------ fused kernel ------------------------------- #
def _make_kernel(tap_shifts, C_pad, BR, MAR):
    def kernel(xslab_ref, lhs_ref, bias_ref, out_ref, patch_ref):
        # Tap-patch matrix: pure unmasked lane-shifted slices of the
        # zero-ring-padded slab (no runtime boundary masks, no dilation).
        for t, shift in enumerate(tap_shifts):
            start = MAR + shift                       # static python int
            patch_ref[t * C_pad:(t + 1) * C_pad, :] = xslab_ref[0, :, start:start + BR]
        # One MXU pass covers all conv layers and all transposed-conv phases
        # of this branch; bias folded into the epilogue.
        acc = jnp.dot(lhs_ref[0], patch_ref[...], preferred_element_type=jnp.float32)
        out_ref[0] = acc + bias_ref[0]
    return kernel


# ------------------------------ forward pass ------------------------------- #
def multi_scale_augmentation2_forward(specs, params_x, params_xm, x, x_mark):
    N, C_x, H, W = x.shape
    Nm, C_m, Hm, Wm = x_mark.shape
    assert (N, H, W) == (Nm, Hm, Wm)
    C_out = int(params_x[0]["b"].shape[0])
    C_pad = _round_up(max(C_x, C_m, 8), 8)

    meta = _plan(specs, C_out, N, H, W)
    R, BR, MAR, WIDTH = meta["R"], meta["BR"], meta["MAR"], meta["WIDTH"]
    K = len(meta["tap_order"]) * C_pad

    slabs = jnp.stack([_build_slab(x, C_pad, meta["ring"], MAR, WIDTH),
                       _build_slab(x_mark, C_pad, meta["ring"], MAR, WIDTH)])
    lhs_x, b_x = _pack_branch(params_x, specs, meta, C_pad, C_out)
    lhs_m, b_m = _pack_branch(params_xm, specs, meta, C_pad, C_out)
    lhs = jnp.stack([lhs_x, lhs_m])                   # (2, R, K)
    bias = jnp.stack([b_x, b_m])                      # (2, R, 1)

    kernel = _make_kernel(meta["tap_shifts"], C_pad, BR, MAR)
    out = pl.pallas_call(
        kernel,
        out_shape=jax.ShapeDtypeStruct((2, R, BR), jnp.float32),
        grid=(2,),                                    # one grid step per branch
        in_specs=[
            pl.BlockSpec((1, C_pad, WIDTH), lambda b: (b, 0, 0)),
            pl.BlockSpec((1, R, K), lambda b: (b, 0, 0)),
            pl.BlockSpec((1, R, 1), lambda b: (b, 0, 0)),
        ],
        out_specs=pl.BlockSpec((1, R, BR), lambda b: (b, 0, 0)),
        scratch_shapes=[pltpu.VMEM((K, BR), jnp.float32)],
        compiler_params=pltpu.CompilerParams(
            dimension_semantics=("parallel",),        # 2 TCs on v7x, cheap loop elsewhere
            vmem_limit_bytes=16 * 1024 * 1024),       # right-sized (~1.5 MiB actual peak)
    )(slabs, lhs, bias)

    # ---- host-side (XLA) unpacking: interior slice + phase interleave ----
    ring, Hp, Wp = meta["ring"], meta["Hp"], meta["Wp"]
    results = [[], []]
    for bi in range(2):
        o = out[bi][:, :meta["M_data"]].reshape(R, N, Hp, Wp)
        o = o[:, :, ring:ring + H, ring:ring + W]     # (R, N, H, W) valid interior
        for lm in meta["layers"]:
            if lm["kind"] == "conv":
                blk = o[lm["row0"]:lm["row0"] + C_out]
                results[bi].append(jnp.transpose(blk, (1, 0, 2, 3)))
            else:
                s, Hd, Wd = lm["s"], lm["Hd"], lm["Wd"]
                full = jnp.zeros((N, C_out, Hd, Wd), jnp.float32)
                for pi, (r, c) in enumerate(lm["phase_rc"]):
                    r0 = lm["ph_rows"][pi]
                    blk = jnp.transpose(o[r0:r0 + C_out], (1, 0, 2, 3))
                    nr = (Hd - r + s - 1) // s
                    nc = (Wd - c + s - 1) // s
                    full = full.at[:, :, r::s, c::s].set(blk[:, :, :nr, :nc])
                results[bi].append(full)
    return results[0], results[1]


# ------------------------------ reference ---------------------------------- #
def _ref_conv(x, w, b, pad):
    out = jax.lax.conv_general_dilated(
        x, w, window_strides=(1, 1), padding=[(pad, pad), (pad, pad)],
        dimension_numbers=("NCHW", "OIHW", "NCHW"))
    return out + b[None, :, None, None]


def _ref_convT(x, w, b, stride, pad):
    k = w.shape[-1]
    wf = jnp.transpose(w[:, :, ::-1, ::-1], (1, 0, 2, 3))
    out = jax.lax.conv_general_dilated(
        x, wf, window_strides=(1, 1),
        padding=[(k - 1 - pad, k - 1 - pad)] * 2,
        lhs_dilation=(stride, stride),
        dimension_numbers=("NCHW", "OIHW", "NCHW"))
    return out + b[None, :, None, None]


if __name__ == "__main__":
    channels, x_mark_channels, num_kernels = 4, 4, 2
    B, H, W = 2, 16, 16

    key = jax.random.PRNGKey(0)
    k1, k2, k3, k4 = jax.random.split(key, 4)
    x = jax.random.normal(k1, (B, channels, H, W), jnp.float32)
    x_mark = jax.random.normal(k2, (B, x_mark_channels, H, W), jnp.float32)

    specs = build_layer_specs(num_kernels)
    params_x = init_branch(k3, channels, channels, specs)
    params_xm = init_branch(k4, x_mark_channels, channels, specs)

    fwd = jax.jit(lambda px, pm, a, bm: multi_scale_augmentation2_forward(specs, px, pm, a, bm))
    res_x, res_xm = fwd(params_x, params_xm, x, x_mark)
    jax.block_until_ready((res_x, res_xm))

    # sanity: shapes + numerical check against XLA conv reference
    for spec, px, pm, ox, om in zip(specs, params_x, params_xm, res_x, res_xm):
        kind, k, pad, stride = spec
        if kind == "conv":
            rx = _ref_conv(x, px["w"], px["b"], pad)
            rm = _ref_conv(x_mark, pm["w"], pm["b"], pad)
        else:
            rx = _ref_convT(x, px["w"], px["b"], stride, pad)
            rm = _ref_convT(x_mark, pm["w"], pm["b"], stride, pad)
        assert ox.shape == rx.shape and om.shape == rm.shape, (ox.shape, rx.shape)
        assert jnp.allclose(ox, rx, rtol=2e-3, atol=2e-3), (kind, k)
        assert jnp.allclose(om, rm, rtol=2e-3, atol=2e-3), (kind, k)

    print("KERNEL_OK")
</pallas_src>

<mosaic_0001>
module attributes {stable_mosaic.version = 11 : i64} {
  func.func @kernel(%arg0: i32, %arg1: memref<1x8x1152xf32, #tpu.memory_space<vmem>>, %arg2: memref<1x64x200xf32, #tpu.memory_space<vmem>>, %arg3: memref<1x64x1xf32, #tpu.memory_space<vmem>>, %arg4: memref<1x64x896xf32, #tpu.memory_space<vmem>>, %arg5: memref<200x896xf32, #tpu.memory_space<vmem>>) attributes {dimension_semantics = [#tpu.dimension_semantics<parallel>], iteration_bounds = array<i64: 2>, scalar_prefetch = 0 : i64, scratch_operands = 1 : i64, tpu.core_type = #tpu.core_type<tc>, window_params = [{transform_indices = @transform_0, window_bounds = array<i64: 1, 8, 1152>}, {transform_indices = @transform_1, window_bounds = array<i64: 1, 64, 200>}, {transform_indices = @transform_2, window_bounds = array<i64: 1, 64, 1>}, {transform_indices = @transform_3, window_bounds = array<i64: 1, 64, 896>}]} {
    %c0 = arith.constant 0 : index
    %c0_0 = arith.constant 0 : index
    %c86 = arith.constant 86 : index
    %0 = vector.load %arg1[%c0, %c0_0, %c86] : memref<1x8x1152xf32, #tpu.memory_space<vmem>>, vector<1x8x896xf32>
    %1 = vector.shape_cast %0 : vector<1x8x896xf32> to vector<8x896xf32>
    %c0_1 = arith.constant 0 : index
    %c0_2 = arith.constant 0 : index
    %2 = vector.load %arg5[%c0_1, %c0_2] : memref<200x896xf32, #tpu.memory_space<vmem>>, vector<8x896xf32>
    tpu.vector_store %arg5[%c0_1, %c0_2], %1 {strides = array<i32>} : memref<200x896xf32, #tpu.memory_space<vmem>>, vector<8x896xf32>,
    %c0_3 = arith.constant 0 : index
    %c0_4 = arith.constant 0 : index
    %c87 = arith.constant 87 : index
    %3 = vector.load %arg1[%c0_3, %c0_4, %c87] : memref<1x8x1152xf32, #tpu.memory_space<vmem>>, vector<1x8x896xf32>
    %4 = vector.shape_cast %3 : vector<1x8x896xf32> to vector<8x896xf32>
    %c8 = arith.constant 8 : index
    %c0_5 = arith.constant 0 : index
    %5 = vector.load %arg5[%c8, %c0_5] : memref<200x896xf32, #tpu.memory_space<vmem>>, vector<8x896xf32>
    tpu.vector_store %arg5[%c8, %c0_5], %4 {strides = array<i32>} : memref<200x896xf32, #tpu.memory_space<vmem>>, vector<8x896xf32>,
    %c0_6 = arith.constant 0 : index
    %c0_7 = arith.constant 0 : index
    %c88 = arith.constant 88 : index
    %6 = vector.load %arg1[%c0_6, %c0_7, %c88] : memref<1x8x1152xf32, #tpu.memory_space<vmem>>, vector<1x8x896xf32>
    %7 = vector.shape_cast %6 : vector<1x8x896xf32> to vector<8x896xf32>
    %c16 = arith.constant 16 : index
    %c0_8 = arith.constant 0 : index
    %8 = vector.load %arg5[%c16, %c0_8] : memref<200x896xf32, #tpu.memory_space<vmem>>, vector<8x896xf32>
    tpu.vector_store %arg5[%c16, %c0_8], %7 {strides = array<i32>} : memref<200x896xf32, #tpu.memory_space<vmem>>, vector<8x896xf32>,
    %c0_9 = arith.constant 0 : index
    %c0_10 = arith.constant 0 : index
    %c89 = arith.constant 89 : index
    %9 = vector.load %arg1[%c0_9, %c0_10, %c89] : memref<1x8x1152xf32, #tpu.memory_space<vmem>>, vector<1x8x896xf32>
    %10 = vector.shape_cast %9 : vector<1x8x896xf32> to vector<8x896xf32>
    %c24 = arith.constant 24 : index
    %c0_11 = arith.constant 0 : index
    %11 = vector.load %arg5[%c24, %c0_11] : memref<200x896xf32, #tpu.memory_space<vmem>>, vector<8x896xf32>
    tpu.vector_store %arg5[%c24, %c0_11], %10 {strides = array<i32>} : memref<200x896xf32, #tpu.memory_space<vmem>>, vector<8x896xf32>,
    %c0_12 = arith.constant 0 : index
    %c0_13 = arith.constant 0 : index
    %c90 = arith.constant 90 : index
    %12 = vector.load %arg1[%c0_12, %c0_13, %c90] : memref<1x8x1152xf32, #tpu.memory_space<vmem>>, vector<1x8x896xf32>
    %13 = vector.shape_cast %12 : vector<1x8x896xf32> to vector<8x896xf32>
    %c32 = arith.constant 32 : index
    %c0_14 = arith.constant 0 : index
    %14 = vector.load %arg5[%c32, %c0_14] : memref<200x896xf32, #tpu.memory_space<vmem>>, vector<8x896xf32>
    tpu.vector_store %arg5[%c32, %c0_14], %13 {strides = array<i32>} : memref<200x896xf32, #tpu.memory_space<vmem>>, vector<8x896xf32>,
    %c0_15 = arith.constant 0 : index
    %c0_16 = arith.constant 0 : index
    %c106 = arith.constant 106 : index
    %15 = vector.load %arg1[%c0_15, %c0_16, %c106] : memref<1x8x1152xf32, #tpu.memory_space<vmem>>, vector<1x8x896xf32>
    %16 = vector.shape_cast %15 : vector<1x8x896xf32> to vector<8x896xf32>
    %c40 = arith.constant 40 : index
    %c0_17 = arith.constant 0 : index
    %17 = vector.load %arg5[%c40, %c0_17] : memref<200x896xf32, #tpu.memory_space<vmem>>, vector<8x896xf32>
    tpu.vector_store %arg5[%c40, %c0_17], %16 {strides = array<i32>} : memref<200x896xf32, #tpu.memory_space<vmem>>, vector<8x896xf32>,
    %c0_18 = arith.constant 0 : index
    %c0_19 = arith.constant 0 : index
    %c107 = arith.constant 107 : index
    %18 = vector.load %arg1[%c0_18, %c0_19, %c107] : memref<1x8x1152xf32, #tpu.memory_space<vmem>>, vector<1x8x896xf32>
    %19 = vector.shape_cast %18 : vector<1x8x896xf32> to vector<8x896xf32>
    %c48 = arith.constant 48 : index
    %c0_20 = arith.constant 0 : index
    %20 = vector.load %arg5[%c48, %c0_20] : memref<200x896xf32, #tpu.memory_space<vmem>>, vector<8x896xf32>
    tpu.vector_store %arg5[%c48, %c0_20], %19 {strides = array<i32>} : memref<200x896xf32, #tpu.memory_space<vmem>>, vector<8x896xf32>,
    %c0_21 = arith.constant 0 : index
    %c0_22 = arith.constant 0 : index
    %c108 = arith.constant 108 : index
    %21 = vector.load %arg1[%c0_21, %c0_22, %c108] : memref<1x8x1152xf32, #tpu.memory_space<vmem>>, vector<1x8x896xf32>
    %22 = vector.shape_cast %21 : vector<1x8x896xf32> to vector<8x896xf32>
    %c56 = arith.constant 56 : index
    %c0_23 = arith.constant 0 : index
    %23 = vector.load %arg5[%c56, %c0_23] : memref<200x896xf32, #tpu.memory_space<vmem>>, vector<8x896xf32>
    tpu.vector_store %arg5[%c56, %c0_23], %22 {strides = array<i32>} : memref<200x896xf32, #tpu.memory_space<vmem>>, vector<8x896xf32>,
    %c0_24 = arith.constant 0 : index
    %c0_25 = arith.constant 0 : index
    %c109 = arith.constant 109 : index
    %24 = vector.load %arg1[%c0_24, %c0_25, %c109] : memref<1x8x1152xf32, #tpu.memory_space<vmem>>, vector<1x8x896xf32>
    %25 = vector.shape_cast %24 : vector<1x8x896xf32> to vector<8x896xf32>
    %c64 = arith.constant 64 : index
    %c0_26 = arith.constant 0 : index
    %26 = vector.load %arg5[%c64, %c0_26] : memref<200x896xf32, #tpu.memory_space<vmem>>, vector<8x896xf32>
    tpu.vector_store %arg5[%c64, %c0_26], %25 {strides = array<i32>} : memref<200x896xf32, #tpu.memory_space<vmem>>, vector<8x896xf32>,
    %c0_27 = arith.constant 0 : index
    %c0_28 = arith.constant 0 : index
    %c110 = arith.constant 110 : index
    %27 = vector.load %arg1[%c0_27, %c0_28, %c110] : memref<1x8x1152xf32, #tpu.memory_space<vmem>>, vector<1x8x896xf32>
    %28 = vector.shape_cast %27 : vector<1x8x896xf32> to vector<8x896xf32>
    %c72 = arith.constant 72 : index
    %c0_29 = arith.constant 0 : index
    %29 = vector.load %arg5[%c72, %c0_29] : memref<200x896xf32, #tpu.memory_space<vmem>>, vector<8x896xf32>
    tpu.vector_store %arg5[%c72, %c0_29], %28 {strides = array<i32>} : memref<200x896xf32, #tpu.memory_space<vmem>>, vector<8x896xf32>,
    %c0_30 = arith.constant 0 : index
    %c0_31 = arith.constant 0 : index
    %c126 = arith.constant 126 : index
    %30 = vector.load %arg1[%c0_30, %c0_31, %c126] : memref<1x8x1152xf32, #tpu.memory_space<vmem>>, vector<1x8x896xf32>
    %31 = vector.shape_cast %30 : vector<1x8x896xf32> to vector<8x896xf32>
    %c80 = arith.constant 80 : index
    %c0_32 = arith.constant 0 : index
    %32 = vector.load %arg5[%c80, %c0_32] : memref<200x896xf32, #tpu.memory_space<vmem>>, vector<8x896xf32>
    tpu.vector_store %arg5[%c80, %c0_32], %31 {strides = array<i32>} : memref<200x896xf32, #tpu.memory_space<vmem>>, vector<8x896xf32>,
    %c0_33 = arith.constant 0 : index
    %c0_34 = arith.constant 0 : index
    %c127 = arith.constant 127 : index
    %33 = vector.load %arg1[%c0_33, %c0_34, %c127] : memref<1x8x1152xf32, #tpu.memory_space<vmem>>, vector<1x8x896xf32>
    %34 = vector.shape_cast %33 : vector<1x8x896xf32> to vector<8x896xf32>
    %c88_35 = arith.constant 88 : index
    %c0_36 = arith.constant 0 : index
    %35 = vector.load %arg5[%c88_35, %c0_36] : memref<200x896xf32, #tpu.memory_space<vmem>>, vector<8x896xf32>
    tpu.vector_store %arg5[%c88_35, %c0_36], %34 {strides = array<i32>} : memref<200x896xf32, #tpu.memory_space<vmem>>, vector<8x896xf32>,
    %c0_37 = arith.constant 0 : index
    %c0_38 = arith.constant 0 : index
    %c128 = arith.constant 128 : index
    %36 = vector.load %arg1[%c0_37, %c0_38, %c128] : memref<1x8x1152xf32, #tpu.memory_space<vmem>>, vector<1x8x896xf32>
    %37 = vector.shape_cast %36 : vector<1x8x896xf32> to vector<8x896xf32>
    %c96 = arith.constant 96 : index
    %c0_39 = arith.constant 0 : index
    %38 = vector.load %arg5[%c96, %c0_39] : memref<200x896xf32, #tpu.memory_space<vmem>>, vector<8x896xf32>
    tpu.vector_store %arg5[%c96, %c0_39], %37 {strides = array<i32>} : memref<200x896xf32, #tpu.memory_space<vmem>>, vector<8x896xf32>,
    %c0_40 = arith.constant 0 : index
    %c0_41 = arith.constant 0 : index
    %c129 = arith.constant 129 : index
    %39 = vector.load %arg1[%c0_40, %c0_41, %c129] : memref<1x8x1152xf32, #tpu.memory_space<vmem>>, vector<1x8x896xf32>
    %40 = vector.shape_cast %39 : vector<1x8x896xf32> to vector<8x896xf32>
    %c104 = arith.constant 104 : index
    %c0_42 = arith.constant 0 : index
    %41 = vector.load %arg5[%c104, %c0_42] : memref<200x896xf32, #tpu.memory_space<vmem>>, vector<8x896xf32>
    tpu.vector_store %arg5[%c104, %c0_42], %40 {strides = array<i32>} : memref<200x896xf32, #tpu.memory_space<vmem>>, vector<8x896xf32>,
    %c0_43 = arith.constant 0 : index
    %c0_44 = arith.constant 0 : index
    %c130 = arith.constant 130 : index
    %42 = vector.load %arg1[%c0_43, %c0_44, %c130] : memref<1x8x1152xf32, #tpu.memory_space<vmem>>, vector<1x8x896xf32>
    %43 = vector.shape_cast %42 : vector<1x8x896xf32> to vector<8x896xf32>
    %c112 = arith.constant 112 : index
    %c0_45 = arith.constant 0 : index
    %44 = vector.load %arg5[%c112, %c0_45] : memref<200x896xf32, #tpu.memory_space<vmem>>, vector<8x896xf32>
    tpu.vector_store %arg5[%c112, %c0_45], %43 {strides = array<i32>} : memref<200x896xf32, #tpu.memory_space<vmem>>, vector<8x896xf32>,
    %c0_46 = arith.constant 0 : index
    %c0_47 = arith.constant 0 : index
    %c146 = arith.constant 146 : index
    %45 = vector.load %arg1[%c0_46, %c0_47, %c146] : memref<1x8x1152xf32, #tpu.memory_space<vmem>>, vector<1x8x896xf32>
    %46 = vector.shape_cast %45 : vector<1x8x896xf32> to vector<8x896xf32>
    %c120 = arith.constant 120 : index
    %c0_48 = arith.constant 0 : index
    %47 = vector.load %arg5[%c120, %c0_48] : memref<200x896xf32, #tpu.memory_space<vmem>>, vector<8x896xf32>
    tpu.vector_store %arg5[%c120, %c0_48], %46 {strides = array<i32>} : memref<200x896xf32, #tpu.memory_space<vmem>>, vector<8x896xf32>,
    %c0_49 = arith.constant 0 : index
    %c0_50 = arith.constant 0 : index
    %c147 = arith.constant 147 : index
    %48 = vector.load %arg1[%c0_49, %c0_50, %c147] : memref<1x8x1152xf32, #tpu.memory_space<vmem>>, vector<1x8x896xf32>
    %49 = vector.shape_cast %48 : vector<1x8x896xf32> to vector<8x896xf32>
    %c128_51 = arith.constant 128 : index
    %c0_52 = arith.constant 0 : index
    %50 = vector.load %arg5[%c128_51, %c0_52] : memref<200x896xf32, #tpu.memory_space<vmem>>, vector<8x896xf32>
    tpu.vector_store %arg5[%c128_51, %c0_52], %49 {strides = array<i32>} : memref<200x896xf32, #tpu.memory_space<vmem>>, vector<8x896xf32>,
    %c0_53 = arith.constant 0 : index
    %c0_54 = arith.constant 0 : index
    %c148 = arith.constant 148 : index
    %51 = vector.load %arg1[%c0_53, %c0_54, %c148] : memref<1x8x1152xf32, #tpu.memory_space<vmem>>, vector<1x8x896xf32>
    %52 = vector.shape_cast %51 : vector<1x8x896xf32> to vector<8x896xf32>
    %c136 = arith.constant 136 : index
    %c0_55 = arith.constant 0 : index
    %53 = vector.load %arg5[%c136, %c0_55] : memref<200x896xf32, #tpu.memory_space<vmem>>, vector<8x896xf32>
    tpu.vector_store %arg5[%c136, %c0_55], %52 {strides = array<i32>} : memref<200x896xf32, #tpu.memory_space<vmem>>, vector<8x896xf32>,
    %c0_56 = arith.constant 0 : index
    %c0_57 = arith.constant 0 : index
    %c149 = arith.constant 149 : index
    %54 = vector.load %arg1[%c0_56, %c0_57, %c149] : memref<1x8x1152xf32, #tpu.memory_space<vmem>>, vector<1x8x896xf32>
    %55 = vector.shape_cast %54 : vector<1x8x896xf32> to vector<8x896xf32>
    %c144 = arith.constant 144 : index
    %c0_58 = arith.constant 0 : index
    %56 = vector.load %arg5[%c144, %c0_58] : memref<200x896xf32, #tpu.memory_space<vmem>>, vector<8x896xf32>
    tpu.vector_store %arg5[%c144, %c0_58], %55 {strides = array<i32>} : memref<200x896xf32, #tpu.memory_space<vmem>>, vector<8x896xf32>,
    %c0_59 = arith.constant 0 : index
    %c0_60 = arith.constant 0 : index
    %c150 = arith.constant 150 : index
    %57 = vector.load %arg1[%c0_59, %c0_60, %c150] : memref<1x8x1152xf32, #tpu.memory_space<vmem>>, vector<1x8x896xf32>
    %58 = vector.shape_cast %57 : vector<1x8x896xf32> to vector<8x896xf32>
    %c152 = arith.constant 152 : index
    %c0_61 = arith.constant 0 : index
    %59 = vector.load %arg5[%c152, %c0_61] : memref<200x896xf32, #tpu.memory_space<vmem>>, vector<8x896xf32>
    tpu.vector_store %arg5[%c152, %c0_61], %58 {strides = array<i32>} : memref<200x896xf32, #tpu.memory_space<vmem>>, vector<8x896xf32>,
    %c0_62 = arith.constant 0 : index
    %c0_63 = arith.constant 0 : index
    %c166 = arith.constant 166 : index
    %60 = vector.load %arg1[%c0_62, %c0_63, %c166] : memref<1x8x1152xf32, #tpu.memory_space<vmem>>, vector<1x8x896xf32>
    %61 = vector.shape_cast %60 : vector<1x8x896xf32> to vector<8x896xf32>
    %c160 = arith.constant 160 : index
    %c0_64 = arith.constant 0 : index
    %62 = vector.load %arg5[%c160, %c0_64] : memref<200x896xf32, #tpu.memory_space<vmem>>, vector<8x896xf32>
    tpu.vector_store %arg5[%c160, %c0_64], %61 {strides = array<i32>} : memref<200x896xf32, #tpu.memory_space<vmem>>, vector<8x896xf32>,
    %c0_65 = arith.constant 0 : index
    %c0_66 = arith.constant 0 : index
    %c167 = arith.constant 167 : index
    %63 = vector.load %arg1[%c0_65, %c0_66, %c167] : memref<1x8x1152xf32, #tpu.memory_space<vmem>>, vector<1x8x896xf32>
    %64 = vector.shape_cast %63 : vector<1x8x896xf32> to vector<8x896xf32>
    %c168 = arith.constant 168 : index
    %c0_67 = arith.constant 0 : index
    %65 = vector.load %arg5[%c168, %c0_67] : memref<200x896xf32, #tpu.memory_space<vmem>>, vector<8x896xf32>
    tpu.vector_store %arg5[%c168, %c0_67], %64 {strides = array<i32>} : memref<200x896xf32, #tpu.memory_space<vmem>>, vector<8x896xf32>,
    %c0_68 = arith.constant 0 : index
    %c0_69 = arith.constant 0 : index
    %c168_70 = arith.constant 168 : index
    %66 = vector.load %arg1[%c0_68, %c0_69, %c168_70] : memref<1x8x1152xf32, #tpu.memory_space<vmem>>, vector<1x8x896xf32>
    %67 = vector.shape_cast %66 : vector<1x8x896xf32> to vector<8x896xf32>
    %c176 = arith.constant 176 : index
    %c0_71 = arith.constant 0 : index
    %68 = vector.load %arg5[%c176, %c0_71] : memref<200x896xf32, #tpu.memory_space<vmem>>, vector<8x896xf32>
    tpu.vector_store %arg5[%c176, %c0_71], %67 {strides = array<i32>} : memref<200x896xf32, #tpu.memory_space<vmem>>, vector<8x896xf32>,
    %c0_72 = arith.constant 0 : index
    %c0_73 = arith.constant 0 : index
    %c169 = arith.constant 169 : index
    %69 = vector.load %arg1[%c0_72, %c0_73, %c169] : memref<1x8x1152xf32, #tpu.memory_space<vmem>>, vector<1x8x896xf32>
    %70 = vector.shape_cast %69 : vector<1x8x896xf32> to vector<8x896xf32>
    %c184 = arith.constant 184 : index
    %c0_74 = arith.constant 0 : index
    %71 = vector.load %arg5[%c184, %c0_74] : memref<200x896xf32, #tpu.memory_space<vmem>>, vector<8x896xf32>
    tpu.vector_store %arg5[%c184, %c0_74], %70 {strides = array<i32>} : memref<200x896xf32, #tpu.memory_space<vmem>>, vector<8x896xf32>,
    %c0_75 = arith.constant 0 : index
    %c0_76 = arith.constant 0 : index
    %c170 = arith.constant 170 : index
    %72 = vector.load %arg1[%c0_75, %c0_76, %c170] : memref<1x8x1152xf32, #tpu.memory_space<vmem>>, vector<1x8x896xf32>
    %73 = vector.shape_cast %72 : vector<1x8x896xf32> to vector<8x896xf32>
    %c192 = arith.constant 192 : index
    %c0_77 = arith.constant 0 : index
    %74 = vector.load %arg5[%c192, %c0_77] : memref<200x896xf32, #tpu.memory_space<vmem>>, vector<8x896xf32>
    tpu.vector_store %arg5[%c192, %c0_77], %73 {strides = array<i32>} : memref<200x896xf32, #tpu.memory_space<vmem>>, vector<8x896xf32>,
    %c0_78 = arith.constant 0 : index
    %c0_79 = arith.constant 0 : index
    %c0_80 = arith.constant 0 : index
    %75 = vector.load %arg2[%c0_78, %c0_79, %c0_80] : memref<1x64x200xf32, #tpu.memory_space<vmem>>, vector<1x64x200xf32>
    %76 = vector.shape_cast %75 : vector<1x64x200xf32> to vector<64x200xf32>
    %c0_81 = arith.constant 0 : index
    %c0_82 = arith.constant 0 : index
    %77 = vector.load %arg5[%c0_81, %c0_82] : memref<200x896xf32, #tpu.memory_space<vmem>>, vector<200x896xf32>
    %cst = arith.constant dense<0.000000e+00> : vector<64x896xf32>
    %78 = tpu.matmul %76, %77, %cst {dimension_numbers = #tpu.dot_dimension_numbers<[1], [0], [0], [1], [0, 0, 1, 1], [], []>} : vector<64x200xf32>, vector<200x896xf32>, vector<64x896xf32> -> vector<64x896xf32>
    %c0_83 = arith.constant 0 : index
    %c0_84 = arith.constant 0 : index
    %c0_85 = arith.constant 0 : index
    %79 = vector.load %arg3[%c0_83, %c0_84, %c0_85] : memref<1x64x1xf32, #tpu.memory_space<vmem>>, vector<1x64x1xf32>
    %80 = vector.shape_cast %79 : vector<1x64x1xf32> to vector<64x1xf32>
    %81 = vector.broadcast %80 : vector<64x1xf32> to vector<64x896xf32>
    %82 = arith.addf %78, %81 : vector<64x896xf32>
    %c0_86 = arith.constant 0 : index
    %c0_87 = arith.constant 0 : index
    %c0_88 = arith.constant 0 : index
    %83 = vector.load %arg4[%c0_86, %c0_87, %c0_88] : memref<1x64x896xf32, #tpu.memory_space<vmem>>, vector<1x64x896xf32>
    %84 = vector.shape_cast %83 : vector<1x64x896xf32> to vector<64x896xf32>
    %85 = vector.shape_cast %82 : vector<64x896xf32> to vector<1x64x896xf32>
    tpu.vector_store %arg4[%c0_86, %c0_87, %c0_88], %85 {strides = array<i32>} : memref<1x64x896xf32, #tpu.memory_space<vmem>>, vector<1x64x896xf32>,
    return
  }
  func.func @transform_0(%arg0: i32) -> (i32, i32, i32) {
    %c0_i32 = arith.constant 0 : i32
    %c0_i32_0 = arith.constant 0 : i32
    %c0_i32_1 = arith.constant 0 : i32
    return %arg0, %c0_i32, %c0_i32_0 : i32, i32, i32
  }
  func.func @transform_1(%arg0: i32) -> (i32, i32, i32) {
    %c0_i32 = arith.constant 0 : i32
    %c0_i32_0 = arith.constant 0 : i32
    %c0_i32_1 = arith.constant 0 : i32
    return %arg0, %c0_i32, %c0_i32_0 : i32, i32, i32
  }
  func.func @transform_2(%arg0: i32) -> (i32, i32, i32) {
    %c0_i32 = arith.constant 0 : i32
    %c0_i32_0 = arith.constant 0 : i32
    %c0_i32_1 = arith.constant 0 : i32
    return %arg0, %c0_i32, %c0_i32_0 : i32, i32, i32
  }
  func.func @transform_3(%arg0: i32) -> (i32, i32, i32) {
    %c0_i32 = arith.constant 0 : i32
    %c0_i32_0 = arith.constant 0 : i32
    %c0_i32_1 = arith.constant 0 : i32
    return %arg0, %c0_i32, %c0_i32_0 : i32, i32, i32
  }
}

</mosaic_0001>

<bundles_post_ra>
// kernel: _lambda_.1
= control target key start
LH: loop header
LB: loop body
LE: loop exit
PB: predicated region body
PF: predicated region fallthrough
CT: control target
= control target key end

     0   :  { %s3086_s12 = smov 0   ;;  %s4007_s0 = inlined_call_operand.vmem [shape: f32[2,8,1152], index: 0, kind: input, shape index: {}]   ;;  %s4008_s1 = inlined_call_operand.vmem [shape: f32[2,64,200], index: 1, kind: input, shape index: {}]   ;;  %s4009_s2 = inlined_call_operand.vmem [shape: f32[2,64,1], index: 2, kind: input, shape index: {}]   ;;  %s4010_s3 = inlined_call_operand.vmem [shape: f32[2,64,896], index: 3, kind: output, shape index: {}]  }
   0x1 LB: > { %s2364_s13 = sadd.s32 4294967295, %s3037_s12   ;;  %p2368_p0 = scmp.ge.s32.totalorder %s3037_s12, 1  ;;  %s3037_s12 = sphi %s3086_s12, %s13_s12  }
   0x2   : > { %p157_p1 = scmp.lt.s32.totalorder %s3037_s12, 3 }
   0x4   : > { %p158_p2 = pnand %p2368_p0, %p157_p1 }
   0x5   : > { %p191_p3 = scmp.lt.s32.totalorder (!%p158_p2), %s2364_s13, 1  ;;  %s3039_s18 = smov (!%p158_p2), 42   ;;  %vm297_vm0 = vcmask (!%p158_p2), 334848   ;;  %vm243_vm1 = vcmask (!%p158_p2), 343040   ;;  %vm351_vm2 = vcmask (!%p158_p2), 326656   ;;  %vm405_vm3 = vcmask (!%p158_p2), 318464  }
   0x6   : > { %161 = sbr.rel (%p158_p2) target bundleno = 603 (0x25b), region = 32  ;;  %s3040_s19 = smov (!%p158_p2), 41   ;;  %vm1760_vm4 = vcmask (!%p158_p2), 588800   ;;  %vm459_vm5 = vcmask (!%p158_p2), 310272   ;;  %vm513_vm6 = vcmask (!%p158_p2), 179200   ;;  %vm567_vm7 = vcmask (!%p158_p2), 171008  }
   0x7   : > { %s3041_s20 = smov (!%p158_p2), 39   ;;  %s3042_s21 = smov (!%p158_p2), 40   ;;  %vm621_vm8 = vcmask (!%p158_p2), 162816   ;;  %vm675_vm9 = vcmask (!%p158_p2), 154624   ;;  %vm729_vm10 = vcmask (!%p158_p2), 146432   ;;  %vm4018_vm11 = vcmask (!%p158_p2), 15360  }
   0x8   : > { %s3043_s22 = smov (!%p158_p2), 22   ;;  %s3044_s23 = smov (!%p158_p2), 38   ;;  %vm837_vm12 = vcmask (!%p158_p2), 7168   ;;  %vm4017_vm13 = vcmask (!%p158_p2), 1039360   ;;  %vm4021_vm14 = vcmask (!%p158_p2), 1031168   ;;  %vm4020_vm15 = vcmask (!%p158_p2), 900096  }
   0x9   : > { %s3045_s24 = smov (!%p158_p2), 20   ;;  %s3046_s25 = smov (!%p158_p2), 21  }
   0xa   : > { %s3047_s26 = smov (!%p158_p2), 18   ;;  %s3048_s27 = smov (!%p158_p2), 19  }
   0xb   : > { %s3049_s28 = smov (!%p158_p2), 1   ;;  %s3050_s29 = smov (!%p158_p2), 2  }
   0xc   : > { %s3051_s30 = smov (!%p158_p2), 127   ;;  %s3052_s4 = smov (!%p158_p2), 126  }
   0xd   : > { %s4067_s13 = smov (!%p191_p3, %s2364_s13), 1  ;;  %s3053_s5 = smov 110  }
   0xe   : > { %s2591_s14 = smul.u32 72, %s4067_s13  ;;  %s3054_s6 = smov 109  }
   0xf   : > { %s3055_s7 = smov 108   ;;  %s3056_s8 = smov 107  }
  0x10   : > { %s3100_s17 = scalar_lea.vmem %s4007_s0, %s2591_s14  ;;  %s4015_s9 = smov 106  }
  0x11   : > { %v3103_v0 = vld [vmem:[%s3100_s17 + $0x20] sm:$0xff]  ;;  %v3106_v1 = vld [vmem:[%s3100_s17 + $0x28] sm:$0xff]  ;;  %v3115_v5 = vld [vmem:[%s3100_s17 + $0x10] sm:$0xff]  ;;  %s4013_s10 = smov 90   ;;  %s4011_s11 = smov 89  }
  0x12   : > { %v211_v2 = vld [vmem:[%s3100_s17] sm:$0xff]  ;;  %v2638_v3 = vpack.i.bf16 %v3106_v1, %v3103_v0  ;;  %v3112_v4 = vld [vmem:[%s3100_s17 + $0x8] sm:$0xff]  ;;  %v3118_v6 = vld [vmem:[%s3100_s17 + $0x18] sm:$0xff]  ;;  %s3060_s14 = smov 88   ;;  %s3061_s15 = smov 87  }
  0x13   : > { %v2628_v7 = vpack.i.bf16 %v3112_v4, %v211_v2  ;;  %v2643_v8 = vpack.i.bf16 %v3115_v5, %v3112_v4  ;;  %v3127_v9 = vpack.i.bf16 %v3118_v6, %v3115_v5  ;;  %v2648_v10 = vpack.i.bf16 %v3118_v6, %v211_v2  ;;  %v3260_v52 = vld [vmem:[%s3100_s17 + $0x30] sm:$0xff]  ;;  %v3263_v53 = vld [vmem:[%s3100_s17 + $0x38] sm:$0xff]  ;;  %s2409_s16 = sshll.u32 %s4067_s13, 7 }
  0x14   : > { %2639 = vrot.lane.b32.xlu1 %v2638_v3, %s3039_s18  ;;  %v3167_v11 = vpack.i.bf16 %v3103_v0, %v3112_v4  ;;  %v3273_v60 = vpack.i.bf16 %v3263_v53, %v3260_v52 }
  0x15   : > { %2629 = vrot.lane.b32.xlu0 %v2628_v7, %s3039_s18 }
  0x18   : > { %2644 = vrot.lane.b32.xlu1 %v2643_v8, %s3040_s19 }
  0x19   : > { %2634 = vrot.lane.b32.xlu0 %v3127_v9, %s3039_s18 }
  0x1c   : > { %2654 = vrot.lane.b32.xlu1 %v2638_v3, %s3040_s19 }
  0x1d   : > { %2649 = vrot.lane.b32.xlu0 %v2648_v10, %s3040_s19 }
  0x20   : > { %2664 = vrot.lane.b32.xlu1 %v2643_v8, %s3041_s20 }
  0x21   : > { %2659 = vrot.lane.b32.xlu0 %v2643_v8, %s3042_s21 }
  0x24   : > { %2674 = vrot.lane.b32.xlu1 %v2638_v3, %s3042_s21 }
  0x25   : > { %2669 = vrot.lane.b32.xlu0 %v2648_v10, %s3042_s21 }
  0x28   : > { %2684 = vrot.lane.b32.xlu1 %v2638_v3, %s3041_s20 }
  0x29   : > { %2679 = vrot.lane.b32.xlu0 %v2648_v10, %s3041_s20 }
  0x2c   : > { %2694 = vrot.lane.b32.xlu1 %v2643_v8, %s3043_s22 }
  0x2d   : > { %2689 = vrot.lane.b32.xlu0 %v2643_v8, %s3044_s23 }
  0x30   : > { %2704 = vrot.lane.b32.xlu1 %v2638_v3, %s3044_s23 }
  0x31   : > { %2699 = vrot.lane.b32.xlu0 %v2648_v10, %s3044_s23 }
  0x34   : > { %2714 = vrot.lane.b32.xlu1 %v2638_v3, %s3043_s22 }
  0x35   : > { %2709 = vrot.lane.b32.xlu0 %v2648_v10, %s3043_s22 }
  0x38   : > { %2724 = vrot.lane.b32.xlu1 %v2643_v8, %s3045_s24 }
  0x39   : > { %2719 = vrot.lane.b32.xlu0 %v2643_v8, %s3046_s25 }
  0x3c   : > { %2734 = vrot.lane.b32.xlu1 %v2638_v3, %s3046_s25 }
  0x3d   : > { %2729 = vrot.lane.b32.xlu0 %v2648_v10, %s3046_s25 }
  0x40   : > { %2744 = vrot.lane.b32.xlu1 %v2638_v3, %s3045_s24 }
  0x41   : > { %2739 = vrot.lane.b32.xlu0 %v2648_v10, %s3045_s24 }
  0x44   : > { %2754 = vrot.lane.b32.xlu1 %v2643_v8, %s3047_s26 }
  0x45   : > { %2749 = vrot.lane.b32.xlu0 %v2643_v8, %s3048_s27 }
  0x48   : > { %2764 = vrot.lane.b32.xlu1 %v2638_v3, %s3048_s27 }
  0x49   : > { %2759 = vrot.lane.b32.xlu0 %v2648_v10, %s3048_s27 }
  0x4c   : > { %2774 = vrot.lane.b32.xlu1 %v2638_v3, %s3047_s26 }
  0x4d   : > { %2769 = vrot.lane.b32.xlu0 %v2648_v10, %s3047_s26 }
  0x50   : > { %2784 = vrot.lane.b32.xlu1 %v2643_v8, %s3049_s28 }
  0x51   : > { %2779 = vrot.lane.b32.xlu0 %v2643_v8, %s3050_s29 }
  0x54   : > { %2794 = vrot.lane.b32.xlu1 %v2638_v3, %s3050_s29 }
  0x55   : > { %2789 = vrot.lane.b32.xlu0 %v2648_v10, %s3050_s29 }
  0x58   : > { %829 = vrot.lane.b32.xlu1 %v3103_v0, %s3049_s28 }
  0x59   : > { %2799 = vrot.lane.b32.xlu0 %v2648_v10, %s3049_s28 }
  0x5c   : > { %2809 = vrot.lane.b32.xlu1 %v3167_v11, %s3051_s30 }
  0x5d   : > { %2804 = vrot.lane.b32.xlu0 %v3127_v9, %s3051_s30 }
  0x60   : > { %2814 = vrot.lane.b32.xlu1 %v3127_v9, %s3052_s4 }
  0x61   : > { %897 = vrot.lane.b32.xlu0 %v3106_v1, %s3051_s30 }
  0x64   : > { %2824 = vrot.lane.b32.xlu1 %v3167_v11, %s3052_s4 }
  0x65   : > { %2819 = vrot.lane.b32.xlu0 %v3127_v9, %s3053_s5 }
  0x68   : > { %2829 = vrot.lane.b32.xlu1 %v3167_v11, %s3053_s5 }
  0x69   : > { %951 = vrot.lane.b32.xlu0 %v3106_v1, %s3052_s4 }
  0x6c   : > { %2834 = vrot.lane.b32.xlu1 %v3127_v9, %s3054_s6 }
  0x6d   : > { %1005 = vrot.lane.b32.xlu0 %v3106_v1, %s3053_s5 }
  0x70   : > { %2844 = vrot.lane.b32.xlu1 %v3167_v11, %s3054_s6 }
  0x71   : > { %2839 = vrot.lane.b32.xlu0 %v3127_v9, %s3055_s7 }
  0x74   : > { %2849 = vrot.lane.b32.xlu1 %v3167_v11, %s3055_s7 }
  0x75   : > { %1059 = vrot.lane.b32.xlu0 %v3106_v1, %s3054_s6 }
  0x78   : > { %2854 = vrot.lane.b32.xlu1 %v3127_v9, %s3056_s8 }
  0x79   : > { %1113 = vrot.lane.b32.xlu0 %v3106_v1, %s3055_s7 }
  0x7c   : > { %2864 = vrot.lane.b32.xlu1 %v3167_v11, %s3056_s8 }
  0x7d   : > { %2859 = vrot.lane.b32.xlu0 %v3127_v9, %s4015_s9 }
  0x80   : > { %2869 = vrot.lane.b32.xlu1 %v3167_v11, %s4015_s9 }
  0x81   : > { %1167 = vrot.lane.b32.xlu0 %v3106_v1, %s3056_s8 }
  0x84   : > { %2874 = vrot.lane.b32.xlu1 %v3127_v9, %s4013_s10 }
  0x85   : > { %1221 = vrot.lane.b32.xlu0 %v3106_v1, %s4015_s9  ;;  %s3284_s9 = scalar_lea.vmem %s4008_s1, %s2409_s16 }
  0x86   : > { %v3214_v12 = vpop.permute.xlu1 %2639  ;;  %v1522_v8 = vld [vmem:[%s3284_s9 + $0x8] sm:$0xff] }
  0x87   : > { %v2630_v13 = vpop.permute.xlu0 %2629  ;;  %v2642_v15 = vunpack.i.h.bf16 %v3214_v12  ;;  %v2641_v19 = vunpack.i.l.bf16 %v3214_v12  ;;  %2375 = vmatprep.mubr.msk.f32.mxu0 %vm1760_vm4, %v1522_v8  ;;  %2383 = vmatprep.mubr.msk.f32.mxu1 %vm1760_vm4, %v1522_v8 }
  0x88   : > { %2884 = vrot.lane.b32.xlu1 %v3167_v11, %s4013_s10  ;;  %v2632_v20 = vunpack.i.h.bf16 %v2630_v13  ;;  %v2631_v21 = vunpack.i.l.bf16 %v2630_v13 }
  0x89   : > { %2879 = vrot.lane.b32.xlu0 %v3127_v9, %s4011_s11  ;;  %v3235_v31 = vsel %vm243_vm1, %v2641_v19, %v2642_v15 }
  0x8a   : > { %v2645_v14 = vpop.permute.xlu1 %2644  ;;  %v244_v34 = vsel %vm243_vm1, %v2631_v21, %v2632_v20 }
  0x8b   : > { %v2647_v16 = vunpack.i.h.bf16 %v2645_v14  ;;  %v2646_v17 = vunpack.i.l.bf16 %v2645_v14  ;;  %v2635_v18 = vpop.permute.xlu0 %2634 }
  0x8c   : > { %v2636_v22 = vunpack.i.l.bf16 %v2635_v18  ;;  %2889 = vrot.lane.b32.xlu1 %v3167_v11, %s4011_s11  ;;  %v2637_v23 = vunpack.i.h.bf16 %v2635_v18 }
  0x8d   : > { %1275 = vrot.lane.b32.xlu0 %v3106_v1, %s4013_s10  ;;  %v299_v24 = vsel %vm297_vm0, %v2646_v17, %v2647_v16 }
  0x8e   : > { %v3227_v25 = vpop.permute.xlu1 %2654  ;;  %v245_v26 = vsel %vm243_vm1, %v2632_v20, %v2636_v22  ;;  %v247_v36 = vsel %vm243_vm1, %v2637_v23, %v2641_v19  ;;  %v246_v37 = vsel %vm243_vm1, %v2636_v22, %v2637_v23 }
  0x8f   : > { %v2657_v27 = vunpack.i.h.bf16 %v3227_v25  ;;  %v2656_v28 = vunpack.i.l.bf16 %v3227_v25  ;;  %v2650_v29 = vpop.permute.xlu0 %2649  ;;  %v2411_v30 = vpack.c.bf16 %v299_v24, %v245_v26 }
  0x90   : > { %v2652_v32 = vunpack.i.h.bf16 %v2650_v29  ;;  %v2651_v33 = vunpack.i.l.bf16 %v2650_v29  ;;  %2894 = vrot.lane.b32.xlu1 %v3127_v9, %s3060_s14 }
  0x91   : > { %v3243_v35 = vsel %vm297_vm0, %v2656_v28, %v2657_v27  ;;  %1329 = vrot.lane.b32.xlu0 %v3106_v1, %s4011_s11  ;;  %2412 = vmatprep.subr.bf16.mxu0 %v2411_v30 }
  0x92   : > { %v2665_v38 = vpop.permute.xlu1 %2664  ;;  %v298_v39 = vsel %vm297_vm0, %v2651_v33, %v2646_v17  ;;  %v301_v40 = vsel %vm297_vm0, %v2652_v32, %v2656_v28  ;;  %v300_v41 = vsel %vm297_vm0, %v2647_v16, %v2652_v32  ;;  %v2509_v42 = vpack.c.bf16 %v3243_v35, %v3235_v31 }
  0x93   : > { %v2667_v43 = vunpack.i.h.bf16 %v2665_v38  ;;  %v2666_v44 = vunpack.i.l.bf16 %v2665_v38  ;;  %v2660_v45 = vpop.permute.xlu0 %2659  ;;  %v2413_v46 = vpack.c.bf16 %v298_v39, %v244_v34  ;;  %v2459_v47 = vpack.c.bf16 %v301_v40, %v247_v36 }
  0x94   : > { %v2662_v48 = vunpack.i.h.bf16 %v2660_v45  ;;  %v2661_v49 = vunpack.i.l.bf16 %v2660_v45  ;;  %2904 = vrot.lane.b32.xlu1 %v3167_v11, %s3060_s14  ;;  %v2461_v50 = vpack.c.bf16 %v300_v41, %v246_v37 }
  0x95   : > { %2899 = vrot.lane.b32.xlu0 %v3127_v9, %s3061_s15  ;;  %2414 = vmatpush1.bf16.msra.mxu0 %v2413_v46  ;;  %v407_v51 = vsel %vm405_vm3, %v2666_v44, %v2667_v43 }
  0x96   : > { %2460 = vmatprep.subr.bf16.mxu1 %v2459_v47  ;;  %v3265_v54 = vpop.permute.xlu1 %2674  ;;  %v353_v55 = vsel %vm351_vm2, %v2661_v49, %v2662_v48 }
  0x97   : > { %2462 = vmatpush1.bf16.msra.mxu1 %v2461_v50  ;;  %v2670_v56 = vpop.permute.xlu0 %2669  ;;  %v2415_v57 = vpack.c.bf16 %v407_v51, %v353_v55  ;;  %v2677_v58 = vunpack.i.h.bf16 %v3265_v54  ;;  %v2676_v61 = vunpack.i.l.bf16 %v3265_v54  ;;  %v3657_v54 = vld [vmem:[%s3284_s9 + $0x38] sm:$0xff] }
  0x98   : > { %v2671_v59 = vunpack.i.l.bf16 %v2670_v56  ;;  %2909 = vrot.lane.b32.xlu1 %v3167_v11, %s3061_s15  ;;  %v2672_v62 = vunpack.i.h.bf16 %v2670_v56 }
  0x99   : > { %1383 = vrot.lane.b32.xlu0 %v3106_v1, %s3060_s14  ;;  %2416 = vmatprep.subr.bf16.mxu0 %v2415_v57  ;;  %v3292_v9 = vsel %vm351_vm2, %v2676_v61, %v2677_v58 }
  0x9a   : > { %v3279_v63 = vpop.permute.xlu1 %2684  ;;  %v352_v13 = vsel %vm351_vm2, %v2671_v59, %v2661_v49  ;;  %v355_v16 = vsel %vm351_vm2, %v2672_v62, %v2676_v61  ;;  %v354_v17 = vsel %vm351_vm2, %v2662_v48, %v2672_v62 }
  0x9b   : > { %v2687_v2 = vunpack.i.h.bf16 %v3279_v63  ;;  %v2686_v3 = vunpack.i.l.bf16 %v3279_v63  ;;  %v2680_v7 = vpop.permute.xlu0 %2679 }
  0x9c   : > { %v2682_v10 = vunpack.i.h.bf16 %v2680_v7  ;;  %v2681_v11 = vunpack.i.l.bf16 %v2680_v7  ;;  %2914 = vrot.lane.b32.xlu1 %v3273_v60, %s3039_s18  ;;  %s3062_s18 = smov 86  }
  0x9d   : > { %v3301_v14 = vsel %vm405_vm3, %v2686_v3, %v2687_v2  ;;  %1437 = vrot.lane.b32.xlu0 %v3106_v1, %s3061_s15 }
  0x9e   : > { %v2695_v18 = vpop.permute.xlu1 %2694  ;;  %v406_v19 = vsel %vm405_vm3, %v2681_v11, %v2666_v44  ;;  %v409_v20 = vsel %vm405_vm3, %v2682_v10, %v2686_v3  ;;  %v408_v21 = vsel %vm405_vm3, %v2667_v43, %v2682_v10  ;;  %v2513_v22 = vpack.c.bf16 %v3301_v14, %v3292_v9 }
  0x9f   : > { %v2697_v23 = vunpack.i.h.bf16 %v2695_v18  ;;  %v2696_v24 = vunpack.i.l.bf16 %v2695_v18  ;;  %v2690_v26 = vpop.permute.xlu0 %2689  ;;  %v2417_v28 = vpack.c.bf16 %v406_v19, %v352_v13  ;;  %v2463_v29 = vpack.c.bf16 %v409_v20, %v355_v16 }
  0xa0   : > { %v2692_v30 = vunpack.i.h.bf16 %v2690_v26  ;;  %v2691_v32 = vunpack.i.l.bf16 %v2690_v26  ;;  %1485 = vrot.lane.b32.xlu1 %v3115_v5, %s3062_s18  ;;  %v2465_v33 = vpack.c.bf16 %v408_v21, %v354_v17 }
  0xa1   : > { %2919 = vrot.lane.b32.xlu0 %v3273_v60, %s3040_s19  ;;  %2418 = vmatpush1.bf16.msra.mxu0 %v2417_v28  ;;  %v515_v34 = vsel %vm513_vm6, %v2696_v24, %v2697_v23  ;;  %s4030_s19 = smov 106  }
  0xa2   : > { %2464 = vmatprep.subr.bf16.mxu1 %v2463_v29  ;;  %v3318_v36 = vpop.permute.xlu1 %2704  ;;  %v461_v37 = vsel %vm459_vm5, %v2691_v32, %v2692_v30 }
  0xa3   : > { %2466 = vmatpush1.bf16.msra.mxu1 %v2465_v33  ;;  %v2700_v38 = vpop.permute.xlu0 %2699  ;;  %v2419_v39 = vpack.c.bf16 %v515_v34, %v461_v37  ;;  %v2707_v40 = vunpack.i.h.bf16 %v3318_v36  ;;  %v2706_v5 = vunpack.i.l.bf16 %v3318_v36 }
  0xa4   : > { %1483 = vrot.lane.b32.xlu1 %v3112_v4, %s3062_s18  ;;  %v2702_v41 = vunpack.i.h.bf16 %v2700_v38  ;;  %v2701_v43 = vunpack.i.l.bf16 %v2700_v38 }
  0xa5   : > { %1487 = vrot.lane.b32.xlu0 %v3118_v6, %s3062_s18  ;;  %2420 = vmatprep.subr.bf16.mxu0 %v2419_v39  ;;  %v3334_v4 = vsel %vm459_vm5, %v2706_v5, %v2707_v40 }
  0xa6   : > { %v3327_v44 = vpop.permute.xlu1 %2714  ;;  %v460_v50 = vsel %vm459_vm5, %v2701_v43, %v2691_v32  ;;  %v463_v51 = vsel %vm459_vm5, %v2702_v41, %v2706_v5  ;;  %v462_v55 = vsel %vm459_vm5, %v2692_v30, %v2702_v41 }
  0xa7   : > { %v2717_v45 = vunpack.i.h.bf16 %v3327_v44  ;;  %v2716_v46 = vunpack.i.l.bf16 %v3327_v44  ;;  %v2710_v47 = vpop.permute.xlu0 %2709 }
  0xa8   : > { %v2712_v48 = vunpack.i.h.bf16 %v2710_v47  ;;  %v2711_v49 = vunpack.i.l.bf16 %v2710_v47  ;;  %1491 = vrot.lane.b32.xlu1 %v3106_v1, %s3062_s18 }
  0xa9   : > { %v3341_v6 = vsel %vm513_vm6, %v2716_v46, %v2717_v45  ;;  %1489 = vrot.lane.b32.xlu0 %v3103_v0, %s3062_s18 }
  0xaa   : > { %v2725_v56 = vpop.permute.xlu1 %2724  ;;  %v514_v57 = vsel %vm513_vm6, %v2711_v49, %v2696_v24  ;;  %v517_v59 = vsel %vm513_vm6, %v2712_v48, %v2716_v46  ;;  %v516_v61 = vsel %vm513_vm6, %v2697_v23, %v2712_v48 }
  0xab   : > { %v2727_v3 = vunpack.i.h.bf16 %v2725_v56  ;;  %v2726_v7 = vunpack.i.l.bf16 %v2725_v56  ;;  %v2720_v8 = vpop.permute.xlu0 %2719  ;;  %v2421_v0 = vpack.c.bf16 %v514_v57, %v460_v50  ;;  %v2467_v10 = vpack.c.bf16 %v517_v59, %v463_v51 }
  0xac   : > { %v2722_v11 = vunpack.i.h.bf16 %v2720_v8  ;;  %v2721_v13 = vunpack.i.l.bf16 %v2720_v8  ;;  %2929 = vrot.lane.b32.xlu1 %v3273_v60, %s3041_s20  ;;  %v2469_v16 = vpack.c.bf16 %v516_v61, %v462_v55  ;;  %s4031_s20 = smov 90  }
  0xad   : > { %2924 = vrot.lane.b32.xlu0 %v3273_v60, %s3042_s21  ;;  %2422 = vmatpush1.bf16.msra.mxu0 %v2421_v0  ;;  %v623_v17 = vsel %vm621_vm8, %v2726_v7, %v2727_v3  ;;  %s4032_s21 = smov 89  }
  0xae   : > { %2468 = vmatprep.subr.bf16.mxu1 %v2467_v10  ;;  %v3358_v18 = vpop.permute.xlu1 %2734  ;;  %v569_v19 = vsel %vm567_vm7, %v2721_v13, %v2722_v11  ;;  %v2968_v10 = vpack.i.bf16 %v3260_v52, %v3106_v1 }
  0xaf   : > { %2470 = vmatpush1.bf16.msra.mxu1 %v2469_v16  ;;  %v2730_v20 = vpop.permute.xlu0 %2729  ;;  %v2423_v21 = vpack.c.bf16 %v623_v17, %v569_v19  ;;  %v4028_v23 = vunpack.i.h.bf16 %v3358_v18  ;;  %v2736_v24 = vunpack.i.l.bf16 %v3358_v18 }
  0xb0   : > { %2939 = vrot.lane.b32.xlu1 %v3273_v60, %s3043_s22  ;;  %v2732_v26 = vunpack.i.h.bf16 %v2730_v20  ;;  %v2731_v28 = vunpack.i.l.bf16 %v2730_v20  ;;  %s2410_s22 = sshll.u32 %s4067_s13, 6 }
  0xb1   : > { %2934 = vrot.lane.b32.xlu0 %v3273_v60, %s3044_s23  ;;  %2424 = vmatprep.subr.bf16.mxu0 %v2423_v21  ;;  %v3374_v34 = vsel %vm567_vm7, %v2736_v24, %v4028_v23 }
  0xb2   : > { %v3367_v29 = vpop.permute.xlu1 %2744  ;;  %v568_v5 = vsel %vm567_vm7, %v2731_v28, %v2721_v13  ;;  %v571_v41 = vsel %vm567_vm7, %v2732_v26, %v2736_v24  ;;  %v570_v43 = vsel %vm567_vm7, %v2722_v11, %v2732_v26 }
  0xb3   : > { %v2747_v30 = vunpack.i.h.bf16 %v3367_v29  ;;  %v2746_v32 = vunpack.i.l.bf16 %v3367_v29  ;;  %v2740_v33 = vpop.permute.xlu0 %2739 }
  0xb4   : > { %v2742_v37 = vunpack.i.h.bf16 %v2740_v33  ;;  %v2741_v38 = vunpack.i.l.bf16 %v2740_v33  ;;  %2949 = vrot.lane.b32.xlu1 %v3273_v60, %s3045_s24 }
  0xb5   : > { %v3381_v39 = vsel %vm621_vm8, %v2746_v32, %v2747_v30  ;;  %2944 = vrot.lane.b32.xlu0 %v3273_v60, %s3046_s25  ;;  %s3576_s25 = scalar_lea.vmem %s4009_s2, %s2410_s22 }
  0xb6   : > { %v2755_v47 = vpop.permute.xlu1 %2754  ;;  %v622_v48 = vsel %vm621_vm8, %v2741_v38, %v2726_v7  ;;  %v625_v49 = vsel %vm621_vm8, %v2742_v37, %v2746_v32  ;;  %v624_v50 = vsel %vm621_vm8, %v2727_v3, %v2742_v37  ;;  %v1716_v46 = vld [vmem:[%s3576_s25 + $0x20] sm:$0xff] }
  0xb7   : > { %v2757_v51 = vunpack.i.h.bf16 %v2755_v47  ;;  %v2756_v55 = vunpack.i.l.bf16 %v2755_v47  ;;  %v2750_v56 = vpop.permute.xlu0 %2749  ;;  %v2425_v57 = vpack.c.bf16 %v622_v48, %v568_v5  ;;  %v2471_v59 = vpack.c.bf16 %v625_v49, %v571_v41  ;;  %v3432_v49 = vld [vmem:[%s3100_s17 + $0x40] sm:$0xff] }
  0xb8   : > { %v2752_v61 = vunpack.i.h.bf16 %v2750_v56  ;;  %v2751_v8 = vunpack.i.l.bf16 %v2750_v56  ;;  %2959 = vrot.lane.b32.xlu1 %v3273_v60, %s3047_s26  ;;  %v2473_v0 = vpack.c.bf16 %v624_v50, %v570_v43 }
  0xb9   : > { %2954 = vrot.lane.b32.xlu0 %v3273_v60, %s3048_s27  ;;  %2426 = vmatpush1.bf16.msra.mxu0 %v2425_v57  ;;  %v731_v3 = vsel %vm729_vm10, %v2756_v55, %v2757_v51 }
  0xba   : > { %2472 = vmatprep.subr.bf16.mxu1 %v2471_v59  ;;  %v3400_v7 = vpop.permute.xlu1 %2764  ;;  %v677_v11 = vsel %vm675_vm9, %v2751_v8, %v2752_v61 }
  0xbb   : > { %2474 = vmatpush1.bf16.msra.mxu1 %v2473_v0  ;;  %v4024_v13 = vunpack.i.h.bf16 %v3400_v7  ;;  %v2766_v16 = vunpack.i.l.bf16 %v3400_v7  ;;  %v2760_v17 = vpop.permute.xlu0 %2759  ;;  %v2427_v19 = vpack.c.bf16 %v731_v3, %v677_v11 }
  0xbc   : > { %2969 = vrot.lane.b32.xlu1 %v2968_v10, %s3049_s28  ;;  %v2762_v20 = vunpack.i.h.bf16 %v2760_v17  ;;  %v2761_v21 = vunpack.i.l.bf16 %v2760_v17 }
  0xbd   : > { %v3409_v1 = vsel %vm675_vm9, %v2766_v16, %v4024_v13  ;;  %2964 = vrot.lane.b32.xlu0 %v3273_v60, %s3050_s29  ;;  %2428 = vmatprep.subr.bf16.mxu0 %v2427_v19 }
  0xbe   : > { %v3413_v24 = vpop.permute.xlu1 %2774  ;;  %v676_v5 = vsel %vm675_vm9, %v2761_v21, %v2751_v8  ;;  %v679_v41 = vsel %vm675_vm9, %v2762_v20, %v2766_v16  ;;  %v678_v43 = vsel %vm675_vm9, %v2752_v61, %v2762_v20 }
  0xbf   : > { %v4027_v26 = vunpack.i.h.bf16 %v3413_v24  ;;  %v2776_v28 = vunpack.i.l.bf16 %v3413_v24  ;;  %v2770_v32 = vpop.permute.xlu0 %2769 }
  0xc0   : > { %v2772_v33 = vunpack.i.h.bf16 %v2770_v32  ;;  %v2771_v37 = vunpack.i.l.bf16 %v2770_v32  ;;  %2974 = vrot.lane.b32.xlu1 %v3273_v60, %s3051_s30 }
  0xc1   : > { %v3422_v38 = vsel %vm729_vm10, %v2776_v28, %v4027_v26  ;;  %835 = vrot.lane.b32.xlu0 %v3263_v53, %s3049_s28 }
  0xc2   : > { %v2785_v48 = vpop.permute.xlu1 %2784  ;;  %v730_v50 = vsel %vm729_vm10, %v2771_v37, %v2756_v55  ;;  %v733_v56 = vsel %vm729_vm10, %v2772_v33, %v2776_v28  ;;  %v732_v57 = vsel %vm729_vm10, %v2757_v51, %v2772_v33 }
  0xc3   : > { %v2787_v59 = vunpack.i.h.bf16 %v2785_v48  ;;  %v2786_v0 = vunpack.i.l.bf16 %v2785_v48  ;;  %v2780_v10 = vpop.permute.xlu0 %2779  ;;  %v2429_v8 = vpack.c.bf16 %v730_v50, %v676_v5  ;;  %v2475_v3 = vpack.c.bf16 %v733_v56, %v679_v41 }
  0xc4   : > { %v2782_v11 = vunpack.i.h.bf16 %v2780_v10  ;;  %v2781_v16 = vunpack.i.l.bf16 %v2780_v10  ;;  %2979 = vrot.lane.b32.xlu1 %v3273_v60, %s3052_s4  ;;  %v2477_v61 = vpack.c.bf16 %v732_v57, %v678_v43 }
  0xc5   : > { %903 = vrot.lane.b32.xlu0 %v3432_v49, %s3051_s30  ;;  %2430 = vmatpush1.bf16.msra.mxu0 %v2429_v8  ;;  %v839_v55 = vsel %vm837_vm12, %v2786_v0, %v2787_v59 }
  0xc6   : > { %2476 = vmatprep.subr.bf16.mxu1 %v2475_v3  ;;  %v3442_v17 = vpop.permute.xlu1 %2794  ;;  %v785_v51 = vsel %vm4018_vm11, %v2781_v16, %v2782_v11 }
  0xc7   : > { %2478 = vmatpush1.bf16.msra.mxu1 %v2477_v61  ;;  %v4019_v19 = vunpack.i.h.bf16 %v3442_v17  ;;  %v2796_v20 = vunpack.i.l.bf16 %v3442_v17  ;;  %v2790_v21 = vpop.permute.xlu0 %2789  ;;  %v2431_v28 = vpack.c.bf16 %v839_v55, %v785_v51 }
  0xc8   : > { %957 = vrot.lane.b32.xlu1 %v3432_v49, %s3052_s4  ;;  %v2792_v33 = vunpack.i.h.bf16 %v2790_v21  ;;  %v2791_v37 = vunpack.i.l.bf16 %v2790_v21 }
  0xc9   : > { %v3452_v32 = vsel %vm4018_vm11, %v2796_v20, %v4019_v19  ;;  %2984 = vrot.lane.b32.xlu0 %v3273_v60, %s3053_s5  ;;  %2432 = vmatprep.subr.bf16.mxu0 %v2431_v28 }
  0xca   : > { %v3456_v5 = vpop.permute.xlu1 %829  ;;  %v784_v50 = vsel %vm4018_vm11, %v2791_v37, %v2781_v16  ;;  %v787_v56 = vsel %vm4018_vm11, %v2792_v33, %v2796_v20  ;;  %v786_v3 = vsel %vm4018_vm11, %v2782_v11, %v2792_v33  ;;  %v862_v11 = vld [vmem:[%s3100_s17 + $0x20] sm:$0xff]  ;;  %vm4022_vm11 = vcmask 883712  }
  0xcb   : > { %v2800_v41 = vpop.permute.xlu0 %2799 }
  0xcc   : > { %v2802_v43 = vunpack.i.h.bf16 %v2800_v41  ;;  %v2801_v48 = vunpack.i.l.bf16 %v2800_v41  ;;  %2989 = vrot.lane.b32.xlu1 %v3273_v60, %s3054_s6  ;;  %v860_v41 = vld [vmem:[%s3100_s17 + $0x10] sm:$0xff] }
  0xcd   : > { %1011 = vrot.lane.b32.xlu0 %v3432_v49, %s3053_s5 }
  0xce   : > { %v2810_v57 = vpop.permute.xlu1 %2809  ;;  %v838_v10 = vsel %vm837_vm12, %v2801_v48, %v2786_v0  ;;  %v841_v8 = vsel %vm837_vm12, %v2802_v43, %v3456_v5  ;;  %v840_v61 = vsel %vm837_vm12, %v2787_v59, %v2802_v43  ;;  %v859_v48 = vld [vmem:[%s3100_s17 + $0x8] sm:$0xff] }
  0xcf   : > { %v2812_v55 = vunpack.i.h.bf16 %v2810_v57  ;;  %v2811_v51 = vunpack.i.l.bf16 %v2810_v57  ;;  %v2805_v21 = vpop.permute.xlu0 %2804  ;;  %v2433_v16 = vpack.c.bf16 %v838_v10, %v784_v50  ;;  %v2479_v28 = vpack.c.bf16 %v841_v8, %v787_v56  ;;  %v861_v10 = vld [vmem:[%s3100_s17 + $0x18] sm:$0xff] }
  0xd0   : > { %v2807_v20 = vunpack.i.h.bf16 %v2805_v21  ;;  %v2806_v37 = vunpack.i.l.bf16 %v2805_v21  ;;  %1065 = vrot.lane.b32.xlu1 %v3432_v49, %s3054_s6  ;;  %v2481_v0 = vpack.c.bf16 %v840_v61, %v786_v3 }
  0xd1   : > { %2994 = vrot.lane.b32.xlu0 %v3273_v60, %s3055_s7  ;;  %2434 = vmatpush1.bf16.msra.mxu0 %v2433_v16 }
  0xd2   : > { %2480 = vmatprep.subr.bf16.mxu1 %v2479_v28  ;;  %v2815_v59 = vpop.permute.xlu1 %2814  ;;  %v907_v33 = vsel %vm4017_vm13, %v2806_v37, %v2807_v20  ;;  %v906_v43 = vsel %vm4017_vm13, %v2811_v51, %v2806_v37  ;;  %v908_v8 = vsel %vm4017_vm13, %v2807_v20, %v2812_v55 }
  0xd3   : > { %2482 = vmatpush1.bf16.msra.mxu1 %v2481_v0  ;;  %v3478_v50 = vpop.permute.xlu0 %897  ;;  %v2435_v56 = vpack.c.bf16 %v907_v33, %v860_v41  ;;  %v2437_v57 = vpack.c.bf16 %v906_v43, %v859_v48  ;;  %v2817_v51 = vunpack.i.h.bf16 %v2815_v59  ;;  %v2816_v21 = vunpack.i.l.bf16 %v2815_v59 }
  0xd4   : > { %v909_v3 = vsel %vm4017_vm13, %v2812_v55, %v3478_v50  ;;  %2999 = vrot.lane.b32.xlu1 %v3273_v60, %s3056_s8  ;;  %v2485_v28 = vpack.c.bf16 %v908_v8, %v861_v10  ;;  %vm4023_vm13 = vcmask 891904  }
  0xd5   : > { %v2483_v61 = vpack.c.bf16 %v909_v3, %v862_v11  ;;  %1119 = vrot.lane.b32.xlu0 %v3432_v49, %s3055_s7  ;;  %2436 = vmatprep.subr.bf16.mxu0 %v2435_v56  ;;  %v961_v48 = vsel %vm4021_vm14, %v2816_v21, %v2817_v51 }
  0xd6   : > { %2438 = vmatpush1.bf16.msra.mxu0 %v2437_v57  ;;  %v2825_v16 = vpop.permute.xlu1 %2824 }
  0xd7   : > { %v2820_v37 = vpop.permute.xlu0 %2819  ;;  %2484 = vmatprep.subr.bf16.mxu1 %v2483_v61  ;;  %v2826_v55 = vunpack.i.l.bf16 %v2825_v16  ;;  %v2827_v57 = vunpack.i.h.bf16 %v2825_v16 }
  0xd8   : > { %v2822_v20 = vunpack.i.h.bf16 %v2820_v37  ;;  %v2821_v0 = vunpack.i.l.bf16 %v2820_v37  ;;  %2486 = vmatpush1.bf16.msra.mxu1 %v2485_v28  ;;  %1173 = vrot.lane.b32.xlu1 %v3432_v49, %s3056_s8 }
  0xd9   : > { %3004 = vrot.lane.b32.xlu0 %v3273_v60, %s4030_s19  ;;  %v960_v10 = vsel %vm4021_vm14, %v2826_v55, %v2816_v21  ;;  %v962_v21 = vsel %vm4021_vm14, %v2817_v51, %v2827_v57 }
  0xda   : > { %v2830_v41 = vpop.permute.xlu1 %2829  ;;  %v1015_v59 = vsel %vm4020_vm15, %v2821_v0, %v2822_v20 }
  0xdb   : > { %v2832_v11 = vunpack.i.h.bf16 %v2830_v41  ;;  %v2831_v33 = vunpack.i.l.bf16 %v2830_v41  ;;  %v3494_v43 = vpop.permute.xlu0 %951  ;;  %v2439_v56 = vpack.c.bf16 %v1015_v59, %v961_v48 }
  0xdc   : > { %3009 = vrot.lane.b32.xlu1 %v3273_v60, %s4031_s20  ;;  %v963_v41 = vsel %vm4021_vm14, %v2827_v57, %v3494_v43  ;;  %vm4029_vm14 = vcmask 867328  }
  0xdd   : > { %1227 = vrot.lane.b32.xlu0 %v3432_v49, %s4030_s19  ;;  %2440 = vmatprep.subr.bf16.mxu0 %v2439_v56  ;;  %v1014_v8 = vsel %vm4020_vm15, %v2831_v33, %v2821_v0  ;;  %v1016_v37 = vsel %vm4020_vm15, %v2822_v20, %v2832_v11 }
  0xde   : > { %v2835_v3 = vpop.permute.xlu1 %2834  ;;  %v2441_v61 = vpack.c.bf16 %v1014_v8, %v960_v10  ;;  %v2489_v20 = vpack.c.bf16 %v1016_v37, %v962_v21 }
  0xdf   : > { %v3502_v28 = vpop.permute.xlu0 %1005  ;;  %v2837_v0 = vunpack.i.h.bf16 %v2835_v3  ;;  %v2836_v55 = vunpack.i.l.bf16 %v2835_v3 }
  0xe0   : > { %v1017_v16 = vsel %vm4020_vm15, %v2832_v11, %v3502_v28  ;;  %1281 = vrot.lane.b32.xlu1 %v3432_v49, %s4031_s20  ;;  %2442 = vmatpush1.bf16.msra.mxu0 %v2441_v61  ;;  %vm1175_vm15 = vcmask 875520  }
  0xe1   : > { %v2487_v48 = vpack.c.bf16 %v1017_v16, %v963_v41  ;;  %3014 = vrot.lane.b32.xlu0 %v3273_v60, %s4032_s21  ;;  %v1069_v51 = vsel %vm4023_vm13, %v2836_v55, %v2837_v0 }
  0xe2   : > { %v2845_v59 = vpop.permute.xlu1 %2844 }
  0xe3   : > { %v2840_v33 = vpop.permute.xlu0 %2839  ;;  %2488 = vmatprep.subr.bf16.mxu1 %v2487_v48  ;;  %v2846_v10 = vunpack.i.l.bf16 %v2845_v59  ;;  %v2847_v16 = vunpack.i.h.bf16 %v2845_v59 }
  0xe4   : > { %v2842_v56 = vunpack.i.h.bf16 %v2840_v33  ;;  %v2841_v11 = vunpack.i.l.bf16 %v2840_v33  ;;  %2490 = vmatpush1.bf16.msra.mxu1 %v2489_v20  ;;  %3019 = vrot.lane.b32.xlu1 %v3273_v60, %s3060_s14 }
  0xe5   : > { %1335 = vrot.lane.b32.xlu0 %v3432_v49, %s4032_s21  ;;  %v1068_v48 = vsel %vm4023_vm13, %v2846_v10, %v2836_v55  ;;  %v1070_v55 = vsel %vm4023_vm13, %v2837_v0, %v2847_v16 }
  0xe6   : > { %v2850_v8 = vpop.permute.xlu1 %2849  ;;  %v1123_v57 = vsel %vm4022_vm11, %v2841_v11, %v2842_v56 }
  0xe7   : > { %v2852_v3 = vunpack.i.h.bf16 %v2850_v8  ;;  %v2851_v61 = vunpack.i.l.bf16 %v2850_v8  ;;  %v3520_v37 = vpop.permute.xlu0 %1059  ;;  %v2443_v41 = vpack.c.bf16 %v1123_v57, %v1069_v51 }
  0xe8   : > { %1389 = vrot.lane.b32.xlu1 %v3432_v49, %s3060_s14  ;;  %v1071_v51 = vsel %vm4023_vm13, %v2847_v16, %v3520_v37  ;;  %vm4025_vm13 = vcmask 728064  }
  0xe9   : > { %3024 = vrot.lane.b32.xlu0 %v3273_v60, %s3061_s15  ;;  %2444 = vmatprep.subr.bf16.mxu0 %v2443_v41  ;;  %v1122_v21 = vsel %vm4022_vm11, %v2851_v61, %v2841_v11  ;;  %v1124_v8 = vsel %vm4022_vm11, %v2842_v56, %v2852_v3 }
  0xea   : > { %v2855_v20 = vpop.permute.xlu1 %2854  ;;  %v2445_v33 = vpack.c.bf16 %v1122_v21, %v1068_v48  ;;  %v2493_v56 = vpack.c.bf16 %v1124_v8, %v1070_v55 }
  0xeb   : > { %v3528_v19 = vpop.permute.xlu0 %1113  ;;  %v2857_v11 = vunpack.i.h.bf16 %v2855_v20  ;;  %v2856_v10 = vunpack.i.l.bf16 %v2855_v20 }
  0xec   : > { %v1125_v59 = vsel %vm4022_vm11, %v2852_v3, %v3528_v19  ;;  %1493 = vrot.lane.b32.xlu1 %v3260_v52, %s3062_s18  ;;  %2446 = vmatpush1.bf16.msra.mxu0 %v2445_v33  ;;  %vm4026_vm11 = vcmask 736256  }
  0xed   : > { %v2491_v60 = vpack.c.bf16 %v1125_v59, %v1071_v51  ;;  %1443 = vrot.lane.b32.xlu0 %v3432_v49, %s3061_s15  ;;  %v1177_v0 = vsel %vm1175_vm15, %v2856_v10, %v2857_v11 }
  0xee   : > { %v2865_v57 = vpop.permute.xlu1 %2864 }
  0xef   : > { %v2860_v61 = vpop.permute.xlu0 %2859  ;;  %2492 = vmatprep.subr.bf16.mxu1 %v2491_v60  ;;  %v2866_v52 = vunpack.i.l.bf16 %v2865_v57  ;;  %v2867_v51 = vunpack.i.h.bf16 %v2865_v57 }
  0xf0   : > { %v2862_v41 = vunpack.i.h.bf16 %v2860_v61  ;;  %v2861_v3 = vunpack.i.l.bf16 %v2860_v61  ;;  %2494 = vmatpush1.bf16.msra.mxu1 %v2493_v56  ;;  %1497 = vrot.lane.b32.xlu1 %v3432_v49, %s3062_s18 }
  0xf1   : > { %1495 = vrot.lane.b32.xlu0 %v3263_v53, %s3062_s18  ;;  %v1176_v59 = vsel %vm1175_vm15, %v2866_v52, %v2856_v10  ;;  %v1178_v57 = vsel %vm1175_vm15, %v2857_v11, %v2867_v51 }
  0xf2   : > { %v2870_v48 = vpop.permute.xlu1 %2869  ;;  %v1231_v16 = vsel %vm4029_vm14, %v2861_v3, %v2862_v41 }
  0xf3   : > { %v2872_v21 = vunpack.i.h.bf16 %v2870_v48  ;;  %v2871_v20 = vunpack.i.l.bf16 %v2870_v48  ;;  %v3546_v33 = vpop.permute.xlu0 %1167  ;;  %v2447_v8 = vpack.c.bf16 %v1231_v16, %v1177_v0 }
  0xf4   : > { %v1179_v61 = vsel %vm1175_vm15, %v2867_v51, %v3546_v33 }
  0xf5   : > { %2448 = vmatprep.subr.bf16.mxu0 %v2447_v8  ;;  %v1230_v49 = vsel %vm4029_vm14, %v2871_v20, %v2861_v3  ;;  %v1232_v53 = vsel %vm4029_vm14, %v2862_v41, %v2872_v21 }
  0xf6   : > { %v2875_v60 = vpop.permute.xlu1 %2874  ;;  %v2449_v55 = vpack.c.bf16 %v1230_v49, %v1176_v59  ;;  %v2497_v3 = vpack.c.bf16 %v1232_v53, %v1178_v57 }
  0xf7   : > { %v3550_v56 = vpop.permute.xlu0 %1221  ;;  %v2877_v16 = vunpack.i.h.bf16 %v2875_v60  ;;  %v2876_v10 = vunpack.i.l.bf16 %v2875_v60 }
  0xf8   : > { %v1233_v48 = vsel %vm4029_vm14, %v2872_v21, %v3550_v56  ;;  %2450 = vmatpush1.bf16.msra.mxu0 %v2449_v55  ;;  %vm1499_vm14 = vcmask 703488  }
  0xf9   : > { %v2495_v0 = vpack.c.bf16 %v1233_v48, %v1179_v61  ;;  %v1285_v47 = vsel %vm4026_vm11, %v2876_v10, %v2877_v16 }
  0xfa   : > { %v2885_v52 = vpop.permute.xlu1 %2884 }
  0xfb   : > { %v2880_v20 = vpop.permute.xlu0 %2879  ;;  %2496 = vmatprep.subr.bf16.mxu1 %v2495_v0  ;;  %v2886_v59 = vunpack.i.l.bf16 %v2885_v52  ;;  %v2887_v53 = vunpack.i.h.bf16 %v2885_v52 }
  0xfc   : > { %v2882_v8 = vunpack.i.h.bf16 %v2880_v20  ;;  %v2881_v41 = vunpack.i.l.bf16 %v2880_v20  ;;  %2498 = vmatpush1.bf16.msra.mxu1 %v2497_v3 }
  0xfd   : > { %v1284_v61 = vsel %vm4026_vm11, %v2886_v59, %v2876_v10  ;;  %v1286_v52 = vsel %vm4026_vm11, %v2877_v16, %v2887_v53  ;;  %v3063_v10 = vmov 0  }
  0xfe   : > { %v2890_v49 = vpop.permute.xlu1 %2889  ;;  %v1339_v21 = vsel %vm4025_vm13, %v2881_v41, %v2882_v8  ;;  %3028 = vset.pattern.permute.xlu0 %v3063_v10  ;;  %3029 = vset.pattern.permute.xlu1 %v3063_v10 }
  0xff   : > { %v2892_v55 = vunpack.i.h.bf16 %v2890_v49  ;;  %v2891_v11 = vunpack.i.l.bf16 %v2890_v49  ;;  %v3560_v51 = vpop.permute.xlu0 %1275  ;;  %v2451_v60 = vpack.c.bf16 %v1339_v21, %v1285_v47 }
 0x100   : > { %v1287_v13 = vsel %vm4026_vm11, %v2887_v53, %v3560_v51  ;;  %vm1445_vm11 = vcmask 711680   ;;  %v1715_v53 = vld [vmem:[%s3576_s25 + $0x18] sm:$0xff] }
 0x101   : > { %2452 = vmatprep.subr.bf16.mxu0 %v2451_v60  ;;  %v1338_v48 = vsel %vm4025_vm13, %v2891_v11, %v2881_v41  ;;  %v1340_v20 = vsel %vm4025_vm13, %v2882_v8, %v2892_v55 }
 0x102   : > { %v2895_v0 = vpop.permute.xlu1 %2894  ;;  %v2453_v57 = vpack.c.bf16 %v1338_v48, %v1284_v61  ;;  %v2501_v21 = vpack.c.bf16 %v1340_v20, %v1286_v52  ;;  %v1714_v48 = vld [vmem:[%s3576_s25 + $0x10] sm:$0xff] }
 0x103   : > { %v3564_v3 = vpop.permute.xlu0 %1329  ;;  %v2897_v8 = vunpack.i.h.bf16 %v2895_v0  ;;  %v2896_v41 = vunpack.i.l.bf16 %v2895_v0 }
 0x104   : > { %v1341_v49 = vsel %vm4025_vm13, %v2892_v55, %v3564_v3  ;;  %2454 = vmatpush1.bf16.msra.mxu0 %v2453_v57  ;;  %v1712_v55 = vld [vmem:[%s3576_s25] sm:$0xff]  ;;  %vm1391_vm13 = vcmask 719872  }
 0x105   : > { %v2499_v47 = vpack.c.bf16 %v1341_v49, %v1287_v13  ;;  %v1713_v13 = vld [vmem:[%s3576_s25 + $0x8] sm:$0xff]  ;;  %1722 = vperm.xlu0 %3028, %v1712_v55   ;;  %v1393_v57 = vsel %vm1391_vm13, %v2896_v41, %v2897_v8 }
 0x106   : > { %v2905_v59 = vpop.permute.xlu1 %2904  ;;  %1727 = vperm.xlu1 %3029, %v1713_v13   ;;  %v1717_v55 = vld [vmem:[%s3576_s25 + $0x28] sm:$0xff] }
 0x107   : > { %v2900_v11 = vpop.permute.xlu0 %2899  ;;  %2500 = vmatprep.subr.bf16.mxu1 %v2499_v47  ;;  %v2906_v61 = vunpack.i.l.bf16 %v2905_v59 }
 0x108   : > { %v2902_v16 = vunpack.i.h.bf16 %v2900_v11  ;;  %v2901_v60 = vunpack.i.l.bf16 %v2900_v11  ;;  %2502 = vmatpush1.bf16.msra.mxu1 %v2501_v21  ;;  %v2907_v21 = vunpack.i.h.bf16 %v2905_v59 }
 0x109   : > { %1737 = vperm.xlu0 %3028, %v1715_v53   ;;  %v1392_v13 = vsel %vm1391_vm13, %v2906_v61, %v2896_v41  ;;  %v1718_v61 = vld [vmem:[%s3576_s25 + $0x30] sm:$0xff] }
 0x10a   : > { %v2910_v0 = vpop.permute.xlu1 %2909  ;;  %v1447_v20 = vsel %vm1445_vm11, %v2901_v60, %v2902_v16  ;;  %1732 = vperm.xlu1 %3029, %v1714_v48   ;;  %v1719_v48 = vld [vmem:[%s3576_s25 + $0x38] sm:$0xff] }
 0x10b   : > { %v2912_v49 = vunpack.i.h.bf16 %v2910_v0  ;;  %v2911_v52 = vunpack.i.l.bf16 %v2910_v0  ;;  %v3584_v47 = vpop.permute.xlu0 %1383  ;;  %v2455_v10 = vpack.c.bf16 %v1447_v20, %v1393_v57 }
 0x10c   : > { %v1395_v53 = vsel %vm1391_vm13, %v2907_v21, %v3584_v47 }
 0x10d   : > { %2456 = vmatprep.subr.bf16.mxu0 %v2455_v10  ;;  %v1446_v11 = vsel %vm1445_vm11, %v2911_v52, %v2901_v60  ;;  %v1448_v0 = vsel %vm1445_vm11, %v2902_v16, %v2912_v49  ;;  %1747 = vperm.xlu0 %3028, %v1717_v55   ;;  %v1394_v60 = vsel %vm1391_vm13, %v2897_v8, %v2907_v21 }
 0x10e   : > { %v2915_v26 = vpop.permute.xlu1 %2914  ;;  %v2457_v23 = vpack.c.bf16 %v1446_v11, %v1392_v13  ;;  %1742 = vperm.xlu1 %3029, %v1716_v46   ;;  %v2505_v20 = vpack.c.bf16 %v1448_v0, %v1394_v60  ;;  %v3609_v11 = vld [vmem:[%s3284_s9] sm:$0xff] }
 0x10f   : > { %v3590_v62 = vpop.permute.xlu0 %1437  ;;  %v2916_v16 = vunpack.i.l.bf16 %v2915_v26  ;;  %v2917_v0 = vunpack.i.h.bf16 %v2915_v26 }
 0x110   : > { %v1449_v59 = vsel %vm1445_vm11, %v2912_v49, %v3590_v62  ;;  %2458 = vmatpush1.bf16.msra.mxu0 %v2457_v23 }
 0x111   : > { %v2503_v41 = vpack.c.bf16 %v1449_v59, %v1395_v53  ;;  %1757 = vperm.xlu0 %3028, %v1719_v48   ;;  %v249_v13 = vsel %vm243_vm1, %v2642_v15, %v2916_v16  ;;  %v3612_v59 = vld [vmem:[%s3284_s9 + $0x18] sm:$0xff]  ;;  %v250_v26 = vsel %vm243_vm1, %v2916_v16, %v2917_v0 }
 0x112   : > { %v1486_v57 = vpop.permute.xlu1 %1485  ;;  %1752 = vperm.xlu1 %3029, %v1718_v61  }
 0x113   : > { %v2920_v52 = vpop.permute.xlu0 %2919  ;;  %2504 = vmatprep.subr.bf16.mxu1 %v2503_v41  ;;  %v3628_v41 = vld [vmem:[%s3284_s9 + $0x10] sm:$0xff] }
 0x114   : > { %v2921_v10 = vunpack.i.l.bf16 %v2920_v52  ;;  %2506 = vmatpush1.bf16.msra.mxu1 %v2505_v20  ;;  %v2922_v46 = vunpack.i.h.bf16 %v2920_v52  ;;  %v3633_v20 = vld [vmem:[%s3284_s9 + $0x28] sm:$0xff] }
 0x116   : > { %v1484_v49 = vpop.permute.xlu1 %1483  ;;  %v303_v23 = vsel %vm297_vm0, %v2657_v27, %v2921_v10  ;;  %v304_v27 = vsel %vm297_vm0, %v2921_v10, %v2922_v46  ;;  %vm4040_vm0 = vcmask 15360  }
 0x117   : > { %v1488_v8 = vpop.permute.xlu0 %1487  ;;  %v1500_v55 = vsel %vm1499_vm14, %v1484_v49, %v1486_v57  ;;  %v2507_v53 = vpack.c.bf16 %v303_v23, %v249_v13  ;;  %v2556_v60 = vpack.c.bf16 %v304_v27, %v250_v26  ;;  %v3644_v23 = vld [vmem:[%s3284_s9 + $0x20] sm:$0xff]  ;;  %vm4041_vm1 = vmmov %vm4040_vm0 }
 0x118   : > { %v1501_v21 = vsel %vm1499_vm14, %v1486_v57, %v1488_v8  ;;  %v3064_v57 = vmov 0.0|0.0  }
 0x119   : > { %1833 = vmatprep.subr.mxu0 %v1501_v21 }
 0x11a   : > { %1834 = vmatpush1.msra.mxu0 %v1500_v55  ;;  %v3614_v25 = vpop.permute.xlu1 %1491 }
 0x11b   : > { %v1490_v48 = vpop.permute.xlu0 %1489  ;;  %2508 = vmatprep.subr.bf16.mxu0 %v2507_v53  ;;  %1850 = vmatmul.mubr.f32.vlgmr.msra.gmra.mrb[0].mxu0 %v3609_v11 }
 0x11c   : > { %2510 = vmatpush1.bf16.msra.mxu0 %v2509_v42  ;;  %v1503_v12 = vsel %vm1499_vm14, %v1490_v48, %v3614_v25  ;;  %v1502_v15 = vsel %vm1499_vm14, %v1488_v8, %v1490_v48  ;;  %2376 = vmatprep.mubr.msk.f32.mxu0 %vm1760_vm4, %v3612_v59 }
 0x11d   : > { %1946 = vmatprep.subr.mxu1 %v1503_v12  ;;  %v3664_v12 = vld [vmem:[%s3284_s9 + $0x30] sm:$0xff] }
 0x11e   : > { %1947 = vmatpush1.msra.mxu1 %v1502_v15  ;;  %v2930_v61 = vpop.permute.xlu1 %2929 }
 0x11f   : > { %v2932_v31 = vunpack.i.h.bf16 %v2930_v61  ;;  %v2931_v35 = vunpack.i.l.bf16 %v2930_v61  ;;  %v2925_v42 = vpop.permute.xlu0 %2924  ;;  %2555 = vmatprep.subr.bf16.mxu1 %v3064_v57  ;;  %1963 = vmatmul.mubr.f32.vlgmr.msra.gmra.mrb[0].mxu1 %v3609_v11 }
 0x120   : > { %v2927_v52 = vunpack.i.h.bf16 %v2925_v42  ;;  %v2926_v10 = vunpack.i.l.bf16 %v2925_v42  ;;  %2557 = vmatpush1.bf16.msra.mxu1 %v2556_v60  ;;  %1856 = vmatmul.mubr.f32.gmra.mrb[2].mxu0 %v3628_v41  ;;  %v3688_v42 = vld [vmem:[%s3284_s9 + $0x40] sm:$0xff] }
 0x121   : > { %v412_v16 = vsel %vm405_vm3, %v2931_v35, %v2932_v31  ;;  %2558 = vmatprep.subr.bf16.mxu1 %v3064_v57  ;;  %v411_v49 = vsel %vm405_vm3, %v2687_v2, %v2931_v35  ;;  %2384 = vmatprep.mubr.msk.f32.mxu1 %vm1760_vm4, %v3612_v59 }
 0x122   : > { %v358_v46 = vsel %vm351_vm2, %v2926_v10, %v2927_v52  ;;  %v2940_v8 = vpop.permute.xlu1 %2939  ;;  %v357_v55 = vsel %vm351_vm2, %v2677_v58, %v2926_v10  ;;  %2377 = vmatprep.mubr.msk.f32.mxu0 %vm1760_vm4, %v3633_v20  ;;  %v4033_v10 = vpack.c.bf16 %v3341_v6, %v3334_v4  ;;  %vm4042_vm2 = vcmask 1039360  }
 0x123   : > { %v2559_v63 = vpack.c.bf16 %v412_v16, %v358_v46  ;;  %v2942_v21 = vunpack.i.h.bf16 %v2940_v8  ;;  %v2941_v2 = vunpack.i.l.bf16 %v2940_v8  ;;  %v2935_v13 = vpop.permute.xlu0 %2934  ;;  %v2511_v0 = vpack.c.bf16 %v411_v49, %v357_v55  ;;  %1969 = vmatmul.mubr.f32.gmra.mrb[2].mxu1 %v3628_v41  ;;  %vm4043_vm3 = vmmov %vm4042_vm2 }
 0x124   : > { %v2937_v53 = vunpack.i.h.bf16 %v2935_v13  ;;  %v2936_v27 = vunpack.i.l.bf16 %v2935_v13  ;;  %1862 = vmatmul.mubr.f32.gmra.mrb[4].mxu0 %v3644_v23  ;;  %2385 = vmatprep.mubr.msk.f32.mxu1 %vm1760_vm4, %v3633_v20  ;;  %v4034_v49 = vunpack.i.h.bf16 %v3358_v18  ;;  %v3705_v18 = vld [vmem:[%s3284_s9 + $0x58] sm:$0xff] }
 0x125   : > { %v520_v58 = vsel %vm513_vm6, %v2941_v2, %v2942_v21  ;;  %2512 = vmatprep.subr.bf16.mxu0 %v2511_v0  ;;  %2560 = vmatpush1.bf16.msra.mxu1 %v2559_v63  ;;  %v519_v48 = vsel %vm513_vm6, %v2717_v45, %v2941_v2  ;;  %v4035_v2 = vunpack.i.h.bf16 %v3413_v24  ;;  %v3712_v0 = vld [vmem:[%s3284_s9 + $0x50] sm:$0xff]  ;;  %vm4045_vm6 = vcmask 1031168  }
 0x126   : > { %v466_v15 = vsel %vm459_vm5, %v2936_v27, %v2937_v53  ;;  %2514 = vmatpush1.bf16.msra.mxu0 %v2513_v22  ;;  %v2950_v26 = vpop.permute.xlu1 %2949  ;;  %2561 = vmatprep.subr.bf16.mxu1 %v3064_v57  ;;  %v465_v60 = vsel %vm459_vm5, %v2707_v40, %v2936_v27  ;;  %v3681_v22 = vld [vmem:[%s3284_s9 + $0x48] sm:$0xff]  ;;  %v4036_v27 = vpack.c.bf16 %v3381_v39, %v3374_v34  ;;  %vm4044_vm5 = vmmov %vm4042_vm2 }
 0x127   : > { %v2562_v61 = vpack.c.bf16 %v520_v58, %v466_v15  ;;  %v2952_v44 = vunpack.i.h.bf16 %v2950_v26  ;;  %v2951_v45 = vunpack.i.l.bf16 %v2950_v26  ;;  %v2945_v31 = vpop.permute.xlu0 %2944  ;;  %v2515_v35 = vpack.c.bf16 %v519_v48, %v465_v60  ;;  %1975 = vmatmul.mubr.f32.gmra.mrb[4].mxu1 %v3644_v23  ;;  %2378 = vmatprep.mubr.msk.f32.mxu0 %vm1760_vm4, %v3657_v54 }
 0x128   : > { %v2947_v9 = vunpack.i.h.bf16 %v2945_v31  ;;  %v2946_v14 = vunpack.i.l.bf16 %v2945_v31  ;;  %1868 = vmatmul.mubr.f32.gmra.mrb[6].mxu0 %v3664_v12  ;;  %2386 = vmatprep.mubr.msk.f32.mxu1 %vm1760_vm4, %v3657_v54  ;;  %v4037_v48 = vunpack.i.h.bf16 %v3400_v7  ;;  %v3729_v7 = vld [vmem:[%s3284_s9 + $0x68] sm:$0xff] }
 0x129   : > { %v628_v36 = vsel %vm621_vm8, %v2951_v45, %v2952_v44  ;;  %2516 = vmatprep.subr.bf16.mxu0 %v2515_v35  ;;  %2563 = vmatpush1.bf16.msra.mxu1 %v2562_v61  ;;  %v627_v40 = vsel %vm621_vm8, %v2747_v30, %v2951_v45  ;;  %v3735_v35 = vld [vmem:[%s3284_s9 + $0x60] sm:$0xff]  ;;  %vm4047_vm8 = vmmov %vm4045_vm6 }
 0x12a   : > { %v574_v52 = vsel %vm567_vm7, %v2946_v14, %v2947_v9  ;;  %2518 = vmatpush1.bf16.msra.mxu0 %v4033_v10  ;;  %v2960_v16 = vpop.permute.xlu1 %2959  ;;  %2564 = vmatprep.subr.bf16.mxu1 %v3064_v57  ;;  %v573_v46 = vsel %vm567_vm7, %v4034_v49, %v2946_v14  ;;  %v4038_v14 = vpack.c.bf16 %v3422_v38, %v3409_v1  ;;  %v863_v10 = vld [vmem:[%s3100_s17 + $0x28] sm:$0xff]  ;;  %vm4046_vm7 = vcmask 900096  }
 0x12b   : > { %v2565_v8 = vpack.c.bf16 %v628_v36, %v574_v52  ;;  %v2962_v29 = vunpack.i.h.bf16 %v2960_v16  ;;  %v2961_v30 = vunpack.i.l.bf16 %v2960_v16  ;;  %v2955_v55 = vpop.permute.xlu0 %2954  ;;  %v2519_v63 = vpack.c.bf16 %v627_v40, %v573_v46  ;;  %1981 = vmatmul.mubr.f32.gmra.mrb[6].mxu1 %v3664_v12  ;;  %2379 = vmatprep.mubr.msk.f32.mxu0 %vm1760_vm4, %v3681_v22 }
 0x12c   : > { %v2957_v4 = vunpack.i.h.bf16 %v2955_v55  ;;  %v2956_v6 = vunpack.i.l.bf16 %v2955_v55  ;;  %1874 = vmatmul.mubr.f32.gmra.mrb[8].mxu0 %v3688_v42  ;;  %2387 = vmatprep.mubr.msk.f32.mxu1 %vm1760_vm4, %v3681_v22  ;;  %v4039_v40 = vunpack.i.h.bf16 %v3442_v17 }
 0x12d   : > { %v736_v21 = vsel %vm729_vm10, %v2961_v30, %v2962_v29  ;;  %2520 = vmatprep.subr.bf16.mxu0 %v2519_v63  ;;  %2566 = vmatpush1.bf16.msra.mxu1 %v2565_v8  ;;  %v735_v13 = vsel %vm729_vm10, %v4035_v2, %v2961_v30  ;;  %vm4049_vm10 = vmmov %vm4045_vm6 }
 0x12e   : > { %v682_v53 = vsel %vm675_vm9, %v2956_v6, %v2957_v4  ;;  %2522 = vmatpush1.bf16.msra.mxu0 %v4036_v27  ;;  %v2970_v58 = vpop.permute.xlu1 %2969  ;;  %2567 = vmatprep.subr.bf16.mxu1 %v3064_v57  ;;  %v681_v15 = vsel %vm675_vm9, %v4037_v48, %v2956_v6  ;;  %v865_v4 = vld [vmem:[%s3100_s17 + $0x38] sm:$0xff]  ;;  %vm4048_vm9 = vmmov %vm4046_vm7 }
 0x12f   : > { %v2568_v26 = vpack.c.bf16 %v736_v21, %v682_v53  ;;  %v2972_v24 = vunpack.i.h.bf16 %v2970_v58  ;;  %v2971_v60 = vunpack.i.l.bf16 %v2970_v58  ;;  %v2965_v61 = vpop.permute.xlu0 %2964  ;;  %v2523_v44 = vpack.c.bf16 %v735_v13, %v681_v15  ;;  %1987 = vmatmul.mubr.f32.gmra.mrb[8].mxu1 %v3688_v42  ;;  %2380 = vmatprep.mubr.msk.f32.mxu0 %vm1760_vm4, %v3705_v18  ;;  %v3765_v21 = vld [vmem:[%s3284_s9 + $0x70] sm:$0xff]  ;;  %v3030_v15 = vld [vmem:[%s3284_s9 + $0x8] sm:$0xff] }
 0x130   : > { %v2967_v34 = vunpack.i.h.bf16 %v2965_v61  ;;  %v2966_v39 = vunpack.i.l.bf16 %v2965_v61  ;;  %1880 = vmatmul.mubr.f32.gmra.mrb[10].mxu0 %v3712_v0  ;;  %2388 = vmatprep.mubr.msk.f32.mxu1 %vm1760_vm4, %v3705_v18 }
 0x131   : > { %v842_v45 = vsel %vm837_vm12, %v3456_v5, %v2971_v60  ;;  %2524 = vmatprep.subr.bf16.mxu0 %v2523_v44  ;;  %2569 = vmatpush1.bf16.msra.mxu1 %v2568_v26  ;;  %v843_v31 = vsel %vm837_vm12, %v2971_v60, %v2972_v24  ;;  %v3746_v5 = vld [vmem:[%s3284_s9 + $0x78] sm:$0xff] }
 0x132   : > { %v2529_v9 = vpack.c.bf16 %v842_v45, %v3452_v32  ;;  %2526 = vmatpush1.bf16.msra.mxu0 %v4038_v14  ;;  %v2975_v36 = vpop.permute.xlu1 %2974  ;;  %v789_v52 = vsel %vm4040_vm0, %v4039_v40, %v2966_v39  ;;  %2570 = vmatprep.subr.bf16.mxu1 %v3064_v57  ;;  %v864_v32 = vld [vmem:[%s3100_s17 + $0x30] sm:$0xff]  ;;  %v790_v1 = vsel %vm4041_vm1, %v2966_v39, %v2967_v34  ;;  %vm4051_vm0 = vcmask 891904   ;;  %s2592_s17 = smul.u32 448, %s4067_s13 }
 0x133   : > { %v2977_v16 = vunpack.i.h.bf16 %v2975_v36  ;;  %v2976_v49 = vunpack.i.l.bf16 %v2975_v36  ;;  %v836_v46 = vpop.permute.xlu0 %835  ;;  %v2527_v8 = vpack.c.bf16 %v843_v31, %v789_v52  ;;  %1993 = vmatmul.mubr.f32.gmra.mrb[10].mxu1 %v3712_v0  ;;  %2381 = vmatprep.mubr.msk.f32.mxu0 %vm1760_vm4, %v3729_v7  ;;  %vm4052_vm1 = vcmask 883712  }
 0x134   : > { %v844_v38 = vsel %vm837_vm12, %v2972_v24, %v836_v46  ;;  %1886 = vmatmul.mubr.f32.gmra.mrb[12].mxu0 %v3735_v35  ;;  %2389 = vmatprep.mubr.msk.f32.mxu1 %vm1760_vm4, %v3729_v7  ;;  %vm4050_vm12 = vmmov %vm4046_vm7  ;;  %s3876_s28 = scalar_lea.vmem %s4010_s3, %s2592_s17 }
 0x135   : > { %v910_v17 = vsel %vm4042_vm2, %v3478_v50, %v2976_v49  ;;  %v2571_v29 = vpack.c.bf16 %v844_v38, %v790_v1  ;;  %2528 = vmatprep.subr.bf16.mxu0 %v2527_v8  ;;  %v911_v30 = vsel %vm4043_vm3, %v2976_v49, %v2977_v16  ;;  %2382 = vmatprep.mubr.msk.f32.mxu0 %vm1760_vm4, %v3746_v5  ;;  %vm4053_vm2 = vmmov %vm4051_vm0 }
 0x136   : > { %v2533_v55 = vpack.c.bf16 %v910_v17, %v863_v10  ;;  %2530 = vmatpush1.bf16.msra.mxu0 %v2529_v9  ;;  %v2980_v63 = vpop.permute.xlu1 %2979  ;;  %v2531_v6 = vpack.c.bf16 %v911_v30, %v864_v32  ;;  %vm4054_vm3 = vmmov %vm4052_vm1 }
 0x137   : > { %v904_v2 = vpop.permute.xlu0 %903  ;;  %2572 = vmatpush1.bf16.msra.mxu1 %v2571_v29  ;;  %v2982_v53 = vunpack.i.h.bf16 %v2980_v63  ;;  %v2981_v27 = vunpack.i.l.bf16 %v2980_v63 }
 0x138   : > { %v912_v13 = vsel %vm4044_vm5, %v2977_v16, %v904_v2  ;;  %2532 = vmatprep.subr.bf16.mxu0 %v2531_v6  ;;  %2573 = vmatprep.subr.bf16.mxu1 %v3064_v57  ;;  %vm4055_vm5 = vmmov %vm4051_vm0 }
 0x139   : > { %v2574_v50 = vpack.c.bf16 %v912_v13, %v865_v4  ;;  %1999 = vmatmul.mubr.f32.gmra.mrb[12].mxu1 %v3735_v35  ;;  %1892 = vmatmul.mubr.f32.gmra.mrb[14].mxu0 %v3765_v21  ;;  %v964_v60 = vsel %vm4045_vm6, %v3494_v43, %v2981_v27  ;;  %v965_v34 = vsel %vm4047_vm8, %v2981_v27, %v2982_v53  ;;  %vm4056_vm6 = vmmov %vm4052_vm1 }
 0x13a   : > { %2534 = vmatpush1.bf16.msra.mxu0 %v2533_v55  ;;  %v958_v58 = vpop.permute.xlu1 %957  ;;  %2390 = vmatprep.mubr.msk.f32.mxu1 %vm1760_vm4, %v3746_v5 }
 0x13b   : > { %v2985_v48 = vpop.permute.xlu0 %2984  ;;  %2575 = vmatpush1.bf16.msra.mxu1 %v2574_v50  ;;  %2391 = vmatprep.mubr.msk.f32.mxu0 %vm1760_vm4, %v3030_v15  ;;  %v966_v14 = vsel %vm4049_vm10, %v2982_v53, %v958_v58  ;;  %vm4060_vm10 = vcmask 736256  }
 0x13c   : > { %v2987_v26 = vunpack.i.h.bf16 %v2985_v48  ;;  %v2986_v24 = vunpack.i.l.bf16 %v2985_v48  ;;  %2576 = vmatprep.subr.bf16.mxu1 %v3064_v57 }
 0x13d   : > { %2005 = vmatmul.mubr.f32.gmra.mrb[14].mxu1 %v3765_v21 }
 0x13e   : > { %v1018_v61 = vsel %vm4046_vm7, %v3502_v28, %v2986_v24  ;;  %v2990_v44 = vpop.permute.xlu1 %2989  ;;  %v1019_v39 = vsel %vm4048_vm9, %v2986_v24, %v2987_v26  ;;  %2399 = vmatprep.mubr.msk.f32.mxu1 %vm1760_vm4, %v3030_v15  ;;  %vm4057_vm7 = vcmask 867328  }
 0x13f   : > { %v2537_v45 = vpack.c.bf16 %v1018_v61, %v964_v60  ;;  %v1012_v31 = vpop.permute.xlu0 %1011  ;;  %v2535_v9 = vpack.c.bf16 %v1019_v39, %v965_v34  ;;  %v2992_v43 = vunpack.i.h.bf16 %v2990_v44  ;;  %v2991_v52 = vunpack.i.l.bf16 %v2990_v44  ;;  %vm4058_vm8 = vmmov %vm4057_vm7 }
 0x140   : > { %v1020_v36 = vsel %vm4050_vm12, %v2987_v26, %v1012_v31  ;;  %vm4059_vm9 = vmmov %vm4057_vm7  ;;  %vm4061_vm12 = vcmask 728064  }
 0x141   : > { %v2577_v40 = vpack.c.bf16 %v1020_v36, %v966_v14  ;;  %2536 = vmatprep.subr.bf16.mxu0 %v2535_v9  ;;  %v1072_v46 = vsel %vm4051_vm0, %v3520_v37, %v2991_v52  ;;  %v1073_v1 = vsel %vm4053_vm2, %v2991_v52, %v2992_v43  ;;  %vm4063_vm0 = vmmov %vm4061_vm12 }
 0x142   : > { %2538 = vmatpush1.bf16.msra.mxu0 %v2537_v45  ;;  %v1066_v28 = vpop.permute.xlu1 %1065  ;;  %vm4065_vm2 = vmmov %vm4063_vm0 }
 0x143   : > { %v2995_v10 = vpop.permute.xlu0 %2994  ;;  %2578 = vmatpush1.bf16.msra.mxu1 %v2577_v40  ;;  %v1074_v55 = vsel %vm4055_vm5, %v2992_v43, %v1066_v28 }
 0x144   : > { %v2997_v16 = vunpack.i.h.bf16 %v2995_v10  ;;  %v2996_v49 = vunpack.i.l.bf16 %v2995_v10  ;;  %2579 = vmatprep.subr.bf16.mxu1 %v3064_v57 }
 0x146   : > { %v1126_v8 = vsel %vm4052_vm1, %v3528_v19, %v2996_v49  ;;  %v3000_v32 = vpop.permute.xlu1 %2999  ;;  %v1127_v38 = vsel %vm4054_vm3, %v2996_v49, %v2997_v16  ;;  %vm4064_vm1 = vmmov %vm4060_vm10 }
 0x147   : > { %v2541_v17 = vpack.c.bf16 %v1126_v8, %v1072_v46  ;;  %v1120_v29 = vpop.permute.xlu0 %1119  ;;  %v2539_v30 = vpack.c.bf16 %v1127_v38, %v1073_v1  ;;  %v3002_v6 = vunpack.i.h.bf16 %v3000_v32  ;;  %v3001_v2 = vunpack.i.l.bf16 %v3000_v32 }
 0x148   : > { %v1128_v63 = vsel %vm4056_vm6, %v2997_v16, %v1120_v29 }
 0x149   : > { %v2580_v4 = vpack.c.bf16 %v1128_v63, %v1074_v55  ;;  %2540 = vmatprep.subr.bf16.mxu0 %v2539_v30  ;;  %v1180_v53 = vsel %vm1175_vm15, %v3546_v33, %v3001_v2  ;;  %v1181_v48 = vsel %vm1175_vm15, %v3001_v2, %v3002_v6 }
 0x14a   : > { %2542 = vmatpush1.bf16.msra.mxu0 %v2541_v17  ;;  %v1174_v37 = vpop.permute.xlu1 %1173 }
 0x14b   : > { %v3005_v13 = vpop.permute.xlu0 %3004  ;;  %2581 = vmatpush1.bf16.msra.mxu1 %v2580_v4  ;;  %v1182_v61 = vsel %vm1175_vm15, %v3002_v6, %v1174_v37  ;;  %vm4062_vm15 = vmmov %vm4060_vm10 }
 0x14c   : > { %v3007_v19 = vunpack.i.h.bf16 %v3005_v13  ;;  %v3006_v50 = vunpack.i.l.bf16 %v3005_v13  ;;  %2582 = vmatprep.subr.bf16.mxu1 %v3064_v57 }
 0x14e   : > { %v1234_v27 = vsel %vm4057_vm7, %v3550_v56, %v3006_v50  ;;  %v3010_v58 = vpop.permute.xlu1 %3009  ;;  %v1235_v15 = vsel %vm4058_vm8, %v3006_v50, %v3007_v19 }
 0x14f   : > { %v2545_v26 = vpack.c.bf16 %v1234_v27, %v1180_v53  ;;  %v1228_v24 = vpop.permute.xlu0 %1227  ;;  %v2543_v60 = vpack.c.bf16 %v1235_v15, %v1181_v48  ;;  %v3012_v39 = vunpack.i.h.bf16 %v3010_v58  ;;  %v3011_v45 = vunpack.i.l.bf16 %v3010_v58 }
 0x150   : > { %v1236_v44 = vsel %vm4059_vm9, %v3007_v19, %v1228_v24  ;;  %v3065_v53 = vmov 0.0  }
 0x151   : > { %v2583_v34 = vpack.c.bf16 %v1236_v44, %v1182_v61  ;;  %2544 = vmatprep.subr.bf16.mxu0 %v2543_v60  ;;  %v1288_v14 = vsel %vm4060_vm10, %v3560_v51, %v3011_v45  ;;  %v1289_v43 = vsel %vm4062_vm15, %v3011_v45, %v3012_v39 }
 0x152   : > { %2546 = vmatpush1.bf16.msra.mxu0 %v2545_v26  ;;  %v1282_v33 = vpop.permute.xlu1 %1281 }
 0x153   : > { %v3015_v31 = vpop.permute.xlu0 %3014  ;;  %2584 = vmatpush1.bf16.msra.mxu1 %v2583_v34  ;;  %v1290_v49 = vsel %vm4064_vm1, %v3012_v39, %v1282_v33 }
 0x154   : > { %v3017_v56 = vunpack.i.h.bf16 %v3015_v31  ;;  %v3016_v9 = vunpack.i.l.bf16 %v3015_v31  ;;  %2585 = vmatprep.subr.bf16.mxu1 %v3064_v57 }
 0x156   : > { %v1342_v36 = vsel %vm4061_vm12, %v3564_v3, %v3016_v9  ;;  %v3020_v40 = vpop.permute.xlu1 %3019  ;;  %v1343_v52 = vsel %vm4063_vm0, %v3016_v9, %v3017_v56 }
 0x157   : > { %v2549_v28 = vpack.c.bf16 %v1342_v36, %v1288_v14  ;;  %v1336_v10 = vpop.permute.xlu0 %1335  ;;  %v2547_v16 = vpack.c.bf16 %v1343_v52, %v1289_v43  ;;  %v3022_v32 = vunpack.i.h.bf16 %v3020_v40  ;;  %v3021_v1 = vunpack.i.l.bf16 %v3020_v40 }
 0x158   : > { %v1344_v46 = vsel %vm4065_vm2, %v3017_v56, %v1336_v10 }
 0x159   : > { %v2586_v8 = vpack.c.bf16 %v1344_v46, %v1290_v49  ;;  %2548 = vmatprep.subr.bf16.mxu0 %v2547_v16  ;;  %v1396_v29 = vsel %vm1391_vm13, %v3584_v47, %v3021_v1  ;;  %v1397_v63 = vsel %vm1391_vm13, %v3021_v1, %v3022_v32 }
 0x15a   : > { %2550 = vmatpush1.bf16.msra.mxu0 %v2549_v28  ;;  %v1390_v51 = vpop.permute.xlu1 %1389 }
 0x15b   : > { %v3025_v38 = vpop.permute.xlu0 %3024  ;;  %2587 = vmatpush1.bf16.msra.mxu1 %v2586_v8  ;;  %v1398_v13 = vsel %vm1391_vm13, %v3022_v32, %v1390_v51 }
 0x15c   : > { %v3027_v3 = vunpack.i.h.bf16 %v3025_v38  ;;  %v3026_v17 = vunpack.i.l.bf16 %v3025_v38  ;;  %2588 = vmatprep.subr.bf16.mxu1 %v3064_v57 }
 0x15e   : > { %v1450_v30 = vsel %vm1445_vm11, %v3590_v62, %v3026_v17  ;;  %v1494_v55 = vpop.permute.xlu1 %1493  ;;  %v1451_v4 = vsel %vm1445_vm11, %v3026_v17, %v3027_v3 }
 0x15f   : > { %v2553_v6 = vpack.c.bf16 %v1450_v30, %v1396_v29  ;;  %v1444_v2 = vpop.permute.xlu0 %1443  ;;  %v2551_v37 = vpack.c.bf16 %v1451_v4, %v1397_v63  ;;  %v1504_v27 = vsel %vm1499_vm14, %v3614_v25, %v1494_v55 }
 0x160   : > { %v1452_v19 = vsel %vm1445_vm11, %v3027_v3, %v1444_v2 }
 0x161   : > { %v2589_v50 = vpack.c.bf16 %v1452_v19, %v1398_v13  ;;  %2552 = vmatprep.subr.bf16.mxu0 %v2551_v37 }
 0x162   : > { %2554 = vmatpush1.bf16.msra.mxu0 %v2553_v6  ;;  %v1498_v57 = vpop.permute.xlu1 %1497 }
 0x163   : > { %v1496_v47 = vpop.permute.xlu0 %1495  ;;  %2590 = vmatpush1.bf16.msra.mxu1 %v2589_v50 }
 0x164   : > { %v1505_v62 = vsel %vm1499_vm14, %v1494_v55, %v1496_v47  ;;  %2172 = vmatprep.subr.mxu1 %v3065_v53  ;;  %v1506_v58 = vsel %vm1499_vm14, %v1496_v47, %v1498_v57 }
 0x165   : > { %2059 = vmatprep.subr.mxu0 %v1505_v62 }
 0x166   : > { %2060 = vmatpush1.msra.mxu0 %v1504_v27 }
 0x167   : > { %2076 = vmatmul.mubr.f32.vlgmr.msra.gmra.mrb[16].mxu0 %v3609_v11  ;;  %2173 = vmatpush1.msra.mxu1 %v1506_v58 }
 0x168   : > { %2189 = vmatmul.mubr.f32.vlgmr.msra.gmra.mrb[16].mxu1 %v3609_v11  ;;  %2392 = vmatprep.mubr.msk.f32.mxu0 %vm1760_vm4, %v3612_v59 }
 0x169   : > { %2400 = vmatprep.mubr.msk.f32.mxu1 %vm1760_vm4, %v3612_v59 }
 0x16b   : > { %2082 = vmatmul.mubr.f32.gmra.mrb[18].mxu0 %v3628_v41 }
 0x16c   : > { %2194 = vmatmul.mubr.f32.gmra.mrb[18].mxu1 %v3628_v41  ;;  %2393 = vmatprep.mubr.msk.f32.mxu0 %vm1760_vm4, %v3633_v20 }
 0x16d   : > { %2401 = vmatprep.mubr.msk.f32.mxu1 %vm1760_vm4, %v3633_v20 }
 0x16f   : > { %2088 = vmatmul.mubr.f32.gmra.mrb[20].mxu0 %v3644_v23 }
 0x170   : > { %2199 = vmatmul.mubr.f32.gmra.mrb[20].mxu1 %v3644_v23  ;;  %2394 = vmatprep.mubr.msk.f32.mxu0 %vm1760_vm4, %v3657_v54 }
 0x171   : > { %2402 = vmatprep.mubr.msk.f32.mxu1 %vm1760_vm4, %v3657_v54 }
 0x173   : > { %2094 = vmatmul.mubr.f32.gmra.mrb[22].mxu0 %v3664_v12 }
 0x174   : > { %2204 = vmatmul.mubr.f32.gmra.mrb[22].mxu1 %v3664_v12  ;;  %2395 = vmatprep.mubr.msk.f32.mxu0 %vm1760_vm4, %v3681_v22 }
 0x175   : > { %2403 = vmatprep.mubr.msk.f32.mxu1 %vm1760_vm4, %v3681_v22 }
 0x177   : > { %2100 = vmatmul.mubr.f32.gmra.mrb[24].mxu0 %v3688_v42 }
 0x178   : > { %2209 = vmatmul.mubr.f32.gmra.mrb[24].mxu1 %v3688_v42  ;;  %2396 = vmatprep.mubr.msk.f32.mxu0 %vm1760_vm4, %v3705_v18 }
 0x179   : > { %2404 = vmatprep.mubr.msk.f32.mxu1 %vm1760_vm4, %v3705_v18 }
 0x17b   : > { %2106 = vmatmul.mubr.f32.gmra.mrb[26].mxu0 %v3712_v0 }
 0x17c   : > { %2214 = vmatmul.mubr.f32.gmra.mrb[26].mxu1 %v3712_v0  ;;  %2397 = vmatprep.mubr.msk.f32.mxu0 %vm1760_vm4, %v3729_v7 }
 0x17d   : > { %2405 = vmatprep.mubr.msk.f32.mxu1 %vm1760_vm4, %v3729_v7 }
 0x17f   : > { %2112 = vmatmul.mubr.f32.gmra.mrb[28].mxu0 %v3735_v35 }
 0x180   : > { %2219 = vmatmul.mubr.f32.gmra.mrb[28].mxu1 %v3735_v35  ;;  %2398 = vmatprep.mubr.msk.f32.mxu0 %vm1760_vm4, %v3746_v5 }
 0x181   : > { %2406 = vmatprep.mubr.msk.f32.mxu1 %vm1760_vm4, %v3746_v5 }
 0x183   : > { %2118 = vmatmul.mubr.f32.gmra.mrb[30].mxu0 %v3765_v21 }
 0x184   : > { %2224 = vmatmul.mubr.f32.gmra.mrb[30].mxu1 %v3765_v21  ;;  %v3871_v11 = vpop.permute.xlu0 %1722 }
 0x185   : > { %v3879_v20 = vpop.permute.xlu1 %1727 }
 0x188   : > { %v3899_v34 = vpop.permute.xlu0 %1737 }
 0x189   : > { %v3889_v5 = vpop.permute.xlu1 %1732 }
 0x18c   : > { %v3919_v32 = vpop.permute.xlu0 %1747 }
 0x18d   : > { %v3909_v40 = vpop.permute.xlu1 %1742 }
 0x190   : > { %v3941_v47 = vpop.permute.xlu0 %1757 }
 0x191   : > { %v3929_v63 = vpop.permute.xlu1 %1752 }
 0x1ee   : > { %v1851_v59 = vpop.f32.mrb[0].mxu0 }
 0x1ef   : > { %v1852_v25 = vadd.f32 %v1851_v59, %v3871_v11  ;;  %v1853_v41 = vpop.f32.mrb[1].mxu0 }
 0x1f0   : > { %v1854_v23 = vadd.f32 %v1853_v41, %v3871_v11 }
 0x1f1   : > { %2229 = vst [vmem:[%s3876_s28] sm:$0xff] %v1852_v25 }
 0x1f2   : > { %2230 = vst [vmem:[%s3876_s28 + $0x8] sm:$0xff] %v1854_v23  ;;  %v1964_v54 = vpop.f32.mrb[0].mxu1 }
 0x1f3   : > { %v1965_v12 = vadd.f32 %v1964_v54, %v3871_v11  ;;  %v1966_v22 = vpop.f32.mrb[1].mxu1  ;;  %v1857_v42 = vpop.f32.mrb[2].mxu0 }
 0x1f4   : > { %v1967_v18 = vadd.f32 %v1966_v22, %v3871_v11  ;;  %v1858_v0 = vadd.f32 %v1857_v42, %v3879_v20  ;;  %v1859_v7 = vpop.f32.mrb[3].mxu0 }
 0x1f5   : > { %2231 = vst [vmem:[%s3876_s28 + $0x10] sm:$0xff] %v1965_v12  ;;  %v1860_v35 = vadd.f32 %v1859_v7, %v3879_v20 }
 0x1f6   : > { %2232 = vst [vmem:[%s3876_s28 + $0x18] sm:$0xff] %v1967_v18  ;;  %2236 = vst [vmem:[%s3876_s28 + $0x38] sm:$0xff] %v1858_v0  ;;  %v1970_v21 = vpop.f32.mrb[2].mxu1 }
 0x1f7   : > { %2237 = vst [vmem:[%s3876_s28 + $0x40] sm:$0xff] %v1860_v35  ;;  %v1971_v48 = vadd.f32 %v1970_v21, %v3879_v20  ;;  %v1972_v15 = vpop.f32.mrb[3].mxu1  ;;  %v1863_v26 = vpop.f32.mrb[4].mxu0 }
 0x1f8   : > { %v1973_v24 = vadd.f32 %v1972_v15, %v3879_v20  ;;  %v1864_v60 = vadd.f32 %v1863_v26, %v3889_v5  ;;  %v1865_v61 = vpop.f32.mrb[5].mxu0 }
 0x1f9   : > { %2238 = vst [vmem:[%s3876_s28 + $0x48] sm:$0xff] %v1971_v48  ;;  %v1866_v44 = vadd.f32 %v1865_v61, %v3889_v5 }
 0x1fa   : > { %2239 = vst [vmem:[%s3876_s28 + $0x50] sm:$0xff] %v1973_v24  ;;  %2243 = vst [vmem:[%s3876_s28 + $0x70] sm:$0xff] %v1864_v60  ;;  %v1976_v39 = vpop.f32.mrb[4].mxu1 }
 0x1fb   : > { %2244 = vst [vmem:[%s3876_s28 + $0x78] sm:$0xff] %v1866_v44  ;;  %v1977_v45 = vadd.f32 %v1976_v39, %v3889_v5  ;;  %v1978_v33 = vpop.f32.mrb[5].mxu1  ;;  %v1869_v31 = vpop.f32.mrb[6].mxu0 }
 0x1fc   : > { %v1979_v56 = vadd.f32 %v1978_v33, %v3889_v5  ;;  %v1870_v9 = vadd.f32 %v1869_v31, %v3899_v34  ;;  %v1871_v14 = vpop.f32.mrb[7].mxu0 }
 0x1fd   : > { %2245 = vst [vmem:[%s3876_s28 + $0x80] sm:$0xff] %v1977_v45  ;;  %v1872_v36 = vadd.f32 %v1871_v14, %v3899_v34 }
 0x1fe   : > { %2246 = vst [vmem:[%s3876_s28 + $0x88] sm:$0xff] %v1979_v56  ;;  %2250 = vst [vmem:[%s3876_s28 + $0xa8] sm:$0xff] %v1870_v9  ;;  %v1982_v43 = vpop.f32.mrb[6].mxu1 }
 0x1ff   : > { %2251 = vst [vmem:[%s3876_s28 + $0xb0] sm:$0xff] %v1872_v36  ;;  %v1983_v52 = vadd.f32 %v1982_v43, %v3899_v34  ;;  %v1984_v28 = vpop.f32.mrb[7].mxu1  ;;  %v1875_v10 = vpop.f32.mrb[8].mxu0 }
 0x200   : > { %v1985_v16 = vadd.f32 %v1984_v28, %v3899_v34  ;;  %v1876_v49 = vadd.f32 %v1875_v10, %v3909_v40  ;;  %v1877_v46 = vpop.f32.mrb[9].mxu0 }
 0x201   : > { %2252 = vst [vmem:[%s3876_s28 + $0xb8] sm:$0xff] %v1983_v52  ;;  %v1878_v8 = vadd.f32 %v1877_v46, %v3909_v40 }
 0x202   : > { %2253 = vst [vmem:[%s3876_s28 + $0xc0] sm:$0xff] %v1985_v16  ;;  %2257 = vst [vmem:[%s3876_s28 + $0xe0] sm:$0xff] %v1876_v49  ;;  %v1988_v1 = vpop.f32.mrb[8].mxu1 }
 0x203   : > { %2258 = vst [vmem:[%s3876_s28 + $0xe8] sm:$0xff] %v1878_v8  ;;  %v1989_v51 = vadd.f32 %v1988_v1, %v3909_v40  ;;  %v1990_v38 = vpop.f32.mrb[9].mxu1  ;;  %v1881_v3 = vpop.f32.mrb[10].mxu0 }
 0x204   : > { %v1991_v17 = vadd.f32 %v1990_v38, %v3909_v40  ;;  %v1882_v29 = vadd.f32 %v1881_v3, %v3919_v32  ;;  %v1883_v30 = vpop.f32.mrb[11].mxu0 }
 0x205   : > { %2259 = vst [vmem:[%s3876_s28 + $0xf0] sm:$0xff] %v1989_v51  ;;  %v1884_v55 = vadd.f32 %v1883_v30, %v3919_v32 }
 0x206   : > { %2260 = vst [vmem:[%s3876_s28 + $0xf8] sm:$0xff] %v1991_v17  ;;  %2264 = vst [vmem:[%s3876_s28 + $0x118] sm:$0xff] %v1882_v29  ;;  %v1994_v4 = vpop.f32.mrb[10].mxu1 }
 0x207   : > { %2265 = vst [vmem:[%s3876_s28 + $0x120] sm:$0xff] %v1884_v55  ;;  %v1995_v6 = vadd.f32 %v1994_v4, %v3919_v32  ;;  %v1996_v2 = vpop.f32.mrb[11].mxu1  ;;  %v1887_v37 = vpop.f32.mrb[12].mxu0 }
 0x208   : > { %v1997_v13 = vadd.f32 %v1996_v2, %v3919_v32  ;;  %v1888_v19 = vadd.f32 %v1887_v37, %v3929_v63  ;;  %v1889_v50 = vpop.f32.mrb[13].mxu0 }
 0x209   : > { %2266 = vst [vmem:[%s3876_s28 + $0x128] sm:$0xff] %v1995_v6  ;;  %v1890_v57 = vadd.f32 %v1889_v50, %v3929_v63 }
 0x20a   : > { %2267 = vst [vmem:[%s3876_s28 + $0x130] sm:$0xff] %v1997_v13  ;;  %2271 = vst [vmem:[%s3876_s28 + $0x150] sm:$0xff] %v1888_v19 }
 0x20b   : > { %2272 = vst [vmem:[%s3876_s28 + $0x158] sm:$0xff] %v1890_v57 }
 0x20c   : > { %v2000_v62 = vpop.f32.mrb[12].mxu1  ;;  %v1893_v53 = vpop.f32.mrb[14].mxu0 }
 0x20d   : > { %v2001_v27 = vadd.f32 %v2000_v62, %v3929_v63  ;;  %v2002_v58 = vpop.f32.mrb[13].mxu1  ;;  %v1894_v59 = vadd.f32 %v1893_v53, %v3941_v47  ;;  %v1895_v25 = vpop.f32.mrb[15].mxu0 }
 0x20e   : > { %v2003_v41 = vadd.f32 %v2002_v58, %v3929_v63  ;;  %v1896_v23 = vadd.f32 %v1895_v25, %v3941_v47 }
 0x20f   : > { %2273 = vst [vmem:[%s3876_s28 + $0x160] sm:$0xff] %v2001_v27  ;;  %2278 = vst [vmem:[%s3876_s28 + $0x188] sm:$0xff] %v1894_v59 }
 0x210   : > { %2274 = vst [vmem:[%s3876_s28 + $0x168] sm:$0xff] %v2003_v41  ;;  %2279 = vst [vmem:[%s3876_s28 + $0x190] sm:$0xff] %v1896_v23  ;;  %v2006_v54 = vpop.f32.mrb[14].mxu1 }
 0x211   : > { %v2007_v12 = vadd.f32 %v2006_v54, %v3941_v47  ;;  %v2008_v22 = vpop.f32.mrb[15].mxu1 }
 0x212   : > { %v2009_v42 = vadd.f32 %v2008_v22, %v3941_v47 }
 0x213   : > { %2280 = vst [vmem:[%s3876_s28 + $0x198] sm:$0xff] %v2007_v12 }
 0x214   : > { %2281 = vst [vmem:[%s3876_s28 + $0x1a0] sm:$0xff] %v2009_v42 }
 0x23a   : > { %v2077_v18 = vpop.f32.mrb[16].mxu0 }
 0x23b   : > { %v2078_v0 = vadd.f32 %v2077_v18, %v3871_v11  ;;  %v2079_v7 = vpop.f32.mrb[17].mxu0  ;;  %v2190_v35 = vpop.f32.mrb[16].mxu1 }
 0x23c   : > { %v2080_v21 = vadd.f32 %v2079_v7, %v3871_v11  ;;  %v2191_v48 = vadd.f32 %v2190_v35, %v3871_v11  ;;  %v2192_v15 = vpop.f32.mrb[17].mxu1 }
 0x23d   : > { %2233 = vst [vmem:[%s3876_s28 + $0x20] sm:$0xff] %v2078_v0 }
 0x23e   : > { %2234 = vst [vmem:[%s3876_s28 + $0x28] sm:$0xff] %v2080_v21  ;;  %2235 = vst [vmem:[%s3876_s28 + $0x30] sm:$0xff] %v2191_v48  ;;  %v2083_v26 = vpop.f32.mrb[18].mxu0 }
 0x23f   : > { %v2084_v24 = vadd.f32 %v2083_v26, %v3879_v20  ;;  %v2085_v60 = vpop.f32.mrb[19].mxu0  ;;  %v2195_v61 = vpop.f32.mrb[18].mxu1 }
 0x240   : > { %v2086_v44 = vadd.f32 %v2085_v60, %v3879_v20  ;;  %v2196_v39 = vadd.f32 %v2195_v61, %v3879_v20  ;;  %v2197_v45 = vpop.f32.mrb[19].mxu1 }
 0x241   : > { %2240 = vst [vmem:[%s3876_s28 + $0x58] sm:$0xff] %v2084_v24 }
 0x242   : > { %2241 = vst [vmem:[%s3876_s28 + $0x60] sm:$0xff] %v2086_v44  ;;  %2242 = vst [vmem:[%s3876_s28 + $0x68] sm:$0xff] %v2196_v39  ;;  %v2089_v11 = vpop.f32.mrb[20].mxu0 }
 0x243   : > { %v2090_v33 = vadd.f32 %v2089_v11, %v3889_v5  ;;  %v2091_v31 = vpop.f32.mrb[21].mxu0  ;;  %v2200_v56 = vpop.f32.mrb[20].mxu1 }
 0x244   : > { %v2092_v9 = vadd.f32 %v2091_v31, %v3889_v5  ;;  %v2201_v14 = vadd.f32 %v2200_v56, %v3889_v5  ;;  %v2202_v36 = vpop.f32.mrb[21].mxu1 }
 0x245   : > { %2247 = vst [vmem:[%s3876_s28 + $0x90] sm:$0xff] %v2090_v33 }
 0x246   : > { %2248 = vst [vmem:[%s3876_s28 + $0x98] sm:$0xff] %v2092_v9  ;;  %2249 = vst [vmem:[%s3876_s28 + $0xa0] sm:$0xff] %v2201_v14  ;;  %v2095_v20 = vpop.f32.mrb[22].mxu0 }
 0x247   : > { %v2096_v43 = vadd.f32 %v2095_v20, %v3899_v34  ;;  %v2097_v52 = vpop.f32.mrb[23].mxu0  ;;  %v2205_v28 = vpop.f32.mrb[22].mxu1 }
 0x248   : > { %v2098_v10 = vadd.f32 %v2097_v52, %v3899_v34  ;;  %v2206_v16 = vadd.f32 %v2205_v28, %v3899_v34  ;;  %v2207_v49 = vpop.f32.mrb[23].mxu1 }
 0x249   : > { %2254 = vst [vmem:[%s3876_s28 + $0xc8] sm:$0xff] %v2096_v43 }
 0x24a   : > { %2255 = vst [vmem:[%s3876_s28 + $0xd0] sm:$0xff] %v2098_v10  ;;  %2256 = vst [vmem:[%s3876_s28 + $0xd8] sm:$0xff] %v2206_v16  ;;  %v2101_v5 = vpop.f32.mrb[24].mxu0 }
 0x24b   : > { %v2102_v46 = vadd.f32 %v2101_v5, %v3909_v40  ;;  %v2103_v8 = vpop.f32.mrb[25].mxu0  ;;  %v2210_v1 = vpop.f32.mrb[24].mxu1 }
 0x24c   : > { %v2104_v51 = vadd.f32 %v2103_v8, %v3909_v40  ;;  %v2211_v38 = vadd.f32 %v2210_v1, %v3909_v40  ;;  %v2212_v3 = vpop.f32.mrb[25].mxu1 }
 0x24d   : > { %2261 = vst [vmem:[%s3876_s28 + $0x100] sm:$0xff] %v2102_v46 }
 0x24e   : > { %2262 = vst [vmem:[%s3876_s28 + $0x108] sm:$0xff] %v2104_v51  ;;  %2263 = vst [vmem:[%s3876_s28 + $0x110] sm:$0xff] %v2211_v38  ;;  %v2107_v34 = vpop.f32.mrb[26].mxu0 }
 0x24f   : > { %v2108_v17 = vadd.f32 %v2107_v34, %v3919_v32  ;;  %v2109_v29 = vpop.f32.mrb[27].mxu0  ;;  %v2215_v30 = vpop.f32.mrb[26].mxu1 }
 0x250   : > { %v2110_v55 = vadd.f32 %v2109_v29, %v3919_v32  ;;  %v2216_v4 = vadd.f32 %v2215_v30, %v3919_v32  ;;  %v2217_v6 = vpop.f32.mrb[27].mxu1 }
 0x251   : > { %2268 = vst [vmem:[%s3876_s28 + $0x138] sm:$0xff] %v2108_v17 }
 0x252   : > { %2269 = vst [vmem:[%s3876_s28 + $0x140] sm:$0xff] %v2110_v55  ;;  %2270 = vst [vmem:[%s3876_s28 + $0x148] sm:$0xff] %v2216_v4  ;;  %v2113_v40 = vpop.f32.mrb[28].mxu0 }
 0x253   : > { %v2114_v2 = vadd.f32 %v2113_v40, %v3929_v63  ;;  %v2115_v37 = vpop.f32.mrb[29].mxu0  ;;  %v2220_v13 = vpop.f32.mrb[28].mxu1 }
 0x254   : > { %v2116_v19 = vadd.f32 %v2115_v37, %v3929_v63  ;;  %v2221_v50 = vadd.f32 %v2220_v13, %v3929_v63  ;;  %v2222_v57 = vpop.f32.mrb[29].mxu1 }
 0x255   : > { %2275 = vst [vmem:[%s3876_s28 + $0x170] sm:$0xff] %v2114_v2 }
 0x256   : > { %2276 = vst [vmem:[%s3876_s28 + $0x178] sm:$0xff] %v2116_v19  ;;  %2277 = vst [vmem:[%s3876_s28 + $0x180] sm:$0xff] %v2221_v50  ;;  %v2119_v32 = vpop.f32.mrb[30].mxu0 }
 0x257   : > { %v2120_v62 = vadd.f32 %v2119_v32, %v3941_v47  ;;  %v2121_v53 = vpop.f32.mrb[31].mxu0  ;;  %v2225_v27 = vpop.f32.mrb[30].mxu1 }
 0x258   : > { %v2122_v58 = vadd.f32 %v2121_v53, %v3941_v47  ;;  %v2226_v59 = vadd.f32 %v2225_v27, %v3941_v47  ;;  %v2227_v25 = vpop.f32.mrb[31].mxu1 }
 0x259   : > { %2282 = vst [vmem:[%s3876_s28 + $0x1a8] sm:$0xff] %v2120_v62 }
 0x25a   : > { %2283 = vst [vmem:[%s3876_s28 + $0x1b0] sm:$0xff] %v2122_v58  ;;  %2284 = vst [vmem:[%s3876_s28 + $0x1b8] sm:$0xff] %v2226_v59 }
 0x25b PF: > { %s13_s12 = sadd.s32 1, %s3037_s12  }
 0x25c   : > { %p10_p4 = scmp.ge.s32.totalorder %s13_s12, 4  }
 0x25e   :  { %12 = sbr.rel (!%p10_p4) target bundleno = 1 (0x1), region = 68 }

</bundles_post_ra>
